<compile_context>
chip_gen: v7x
topology: tpu7x:2x2x1
jax: 0.10.0
libtpu: 0.0.40
codegen_flags: <defaults>
</compile_context>

<pallas_src>
import jax
import jax.numpy as jnp
from jax.experimental import pallas as pl
from jax.experimental.pallas import tpu as pltpu


# ----------------------------------------------------------------------------
# Module "parameters" (Graph.vertex is unused by forward; kept for parity)
# ----------------------------------------------------------------------------
NUM_CLASSES = 21
CLASS_MAX_VERTICES = 5


def init_graph_params(key):
    vertex = jax.random.normal(key, (NUM_CLASSES, CLASS_MAX_VERTICES), jnp.float32)
    return {"vertex": vertex}


def get_class_vertices(params):
    return params["vertex"]


# ----------------------------------------------------------------------------
# VMEM planning / tile picking (generation aware)
# ----------------------------------------------------------------------------
def _ceil_to(a, m):
    return -(-a // m) * m


def _vmem_plan():
    """Returns (vmem_limit_bytes, tile-picking budget).

    v5e/v6e have 128 MiB physical VMEM -> raise the scoped limit well past the
    16/32 MiB defaults; v7x has 64 MiB -> stay conservative."""
    phys = 64 * 1024 * 1024
    try:
        phys = int(pltpu.get_tpu_info().vmem_capacity_bytes)
    except Exception:
        pass
    if phys >= 128 * 1024 * 1024:
        limit = 96 * 1024 * 1024
    else:
        limit = min(40 * 1024 * 1024, max(phys // 2, 16 * 1024 * 1024))
    return limit, limit // 2


def _block_bytes(b_tile, h_tile, w, in_itemsize):
    """Approx per-grid-step VMEM: double-buffered blocks + in-kernel temporaries."""
    lanes_in = _ceil_to(w, 128)
    lanes_out = _ceil_to(w * 5, 128)
    subs = _ceil_to(h_tile, 8)
    in_blk = b_tile * subs * lanes_in * in_itemsize
    halo_blk = 2 * b_tile * 8 * lanes_in * in_itemsize
    out_blk = b_tile * subs * lanes_out * 4
    temps = b_tile * h_tile * (6 * lanes_in + 2 * lanes_out) * 4
    return 2 * (in_blk + halo_blk + out_blk) + temps


def _divisors_desc(n):
    return [d for d in range(n, 0, -1) if n % d == 0]


def _pick_tiles(bs, h, w, in_itemsize, budget):
    # 1) Full-h blocks; largest batch tile that fits the budget.
    h_tile = h
    b_tile = next((d for d in _divisors_desc(bs)
                   if _block_bytes(d, h, w, in_itemsize) <= budget), 1)
    # 2) If even one full-h image per step is too big, tile h (multiples of 8
    #    so the 8-row halo blocks line up with tile boundaries).
    if _block_bytes(b_tile, h_tile, w, in_itemsize) > budget:
        b_tile = 1
        cands = [d for d in _divisors_desc(h) if d % 8 == 0]
        h_tile = next((d for d in cands
                       if _block_bytes(1, d, w, in_itemsize) <= budget),
                      cands[-1] if cands else h)
        # TODO(synk): ragged/masked last h-tile for h with no multiple-of-8
        # divisor; falls back to full-h blocks in that case.
    # 3) Keep >= 2 grid steps when possible so DMA overlaps compute/writeback
    #    and both v7x TensorCores get work.
    if (bs // b_tile) * (h // h_tile) < 2:
        if bs >= 2:
            b_tile = next(d for d in _divisors_desc(bs) if d < bs)
        else:
            split = [d for d in _divisors_desc(h) if d % 8 == 0 and d < h]
            if split:
                h_tile = split[0]
    return b_tile, h_tile


def _build_specs(bs, h, w, in_dtype):
    itemsize = jnp.dtype(in_dtype).itemsize
    vmem_limit, budget = _vmem_plan()
    b_tile, h_tile = _pick_tiles(bs, h, w, itemsize, budget)
    hb = 8 if h >= 8 else h                 # halo block height (sublane aligned)
    hpb = max(h_tile // hb, 1)              # halo blocks per h-tile
    last_hblk = (h - 1) // hb               # last valid halo-block index

    in_specs = [
        # Row just above the tile lives in the previous 8-row block (clamped;
        # the first-tile case is resolved to replicate padding in the kernel).
        pl.BlockSpec((b_tile, hb, w),
                     lambda b, i: (b, jnp.maximum(i * hpb - 1, 0), 0)),
        pl.BlockSpec((b_tile, h_tile, w), lambda b, i: (b, i, 0)),
        # Row just below the tile = row 0 of the next tile's first 8-row block.
        pl.BlockSpec((b_tile, hb, w),
                     lambda b, i: (b, jnp.minimum((i + 1) * hpb, last_hblk), 0)),
    ]
    grid = (bs // b_tile, h // h_tile)
    cparams = pltpu.CompilerParams(
        dimension_semantics=("parallel", "parallel"),
        vmem_limit_bytes=vmem_limit)
    return grid, in_specs, cparams, b_tile, h_tile


# ----------------------------------------------------------------------------
# Kernel bodies
# ----------------------------------------------------------------------------
def _neighbor_planes(x, top_row, bot_row, use_roll):
    """x: (B, HT, W) f32; top_row/bot_row: (B, 1, W) f32 rows just outside the
    tile (already resolved to replicate padding at the image borders).
    Returns (center, up, right, down, left) in the module's channel order."""
    _, ht, w = x.shape
    if w > 1:
        if use_roll:
            col = jax.lax.broadcasted_iota(jnp.int32, x.shape, 2)
            left = jnp.where(col == 0, x, pltpu.roll(x, shift=1, axis=2))            # k-1
            right = jnp.where(col == w - 1, x, pltpu.roll(x, shift=w - 1, axis=2))   # k+1
        else:
            left = jnp.concatenate([x[:, :, :1], x[:, :, :w - 1]], axis=2)
            right = jnp.concatenate([x[:, :, 1:], x[:, :, w - 1:]], axis=2)
    else:
        left = right = x
    if ht > 1:
        up = jnp.concatenate([top_row, x[:, :ht - 1, :]], axis=1)                     # j-1
        down = jnp.concatenate([x[:, 1:, :], bot_row], axis=1)                        # j+1
    else:
        up, down = top_row, bot_row
    return x, up, right, down, left


def _planes_from_refs(top_ref, x_ref, bot_ref, use_roll):
    i_h = pl.program_id(1)
    n_h = pl.num_programs(1)
    x = x_ref[...].astype(jnp.float32)       # cast in-kernel (VPU is idle here)
    ht = x.shape[1]
    hb = top_ref.shape[1]
    # Halo rows; first/last h-tile uses the tile's own border row (replicate pad).
    top_row = jnp.where(i_h == 0, x[:, :1, :],
                        top_ref[:, hb - 1:hb, :].astype(jnp.float32))
    bot_row = jnp.where(i_h == n_h - 1, x[:, ht - 1:ht, :],
                        bot_ref[:, 0:1, :].astype(jnp.float32))
    return _neighbor_planes(x, top_row, bot_row, use_roll)


def _graph_kernel_fused(top_ref, x_ref, bot_ref, o_ref):
    planes = _planes_from_refs(top_ref, x_ref, bot_ref, use_roll=True)
    b, ht, w = planes[0].shape
    stacked = jnp.stack(planes, axis=-1)              # (B, HT, W, 5)
    # Interleave into a lane-dense row (B, HT, W*5): bit-identical to the
    # row-major (B, HT, W, 5) layout, but stores / output DMA are fully dense.
    o_ref[...] = stacked.reshape(b, ht, w * 5)


def _graph_kernel_planar(top_ref, x_ref, bot_ref,
                         c_ref, u_ref, r_ref, d_ref, l_ref):
    c, u, r, d, l = _planes_from_refs(top_ref, x_ref, bot_ref, use_roll=False)
    c_ref[...] = c
    u_ref[...] = u
    r_ref[...] = r
    d_ref[...] = d
    l_ref[...] = l


# ----------------------------------------------------------------------------
# Wrappers
# ----------------------------------------------------------------------------
def _forward_fused(ingredients):
    bs, h, w = ingredients.shape
    grid, in_specs, cparams, b_tile, h_tile = _build_specs(bs, h, w, ingredients.dtype)
    out_flat = pl.pallas_call(
        _graph_kernel_fused,
        out_shape=jax.ShapeDtypeStruct((bs, h, w * 5), jnp.float32),
        grid_spec=pltpu.PrefetchScalarGridSpec(
            num_scalar_prefetch=0,
            grid=grid,
            in_specs=in_specs,
            out_specs=pl.BlockSpec((b_tile, h_tile, w * 5), lambda b, i: (b, i, 0)),
        ),
        compiler_params=cparams,
    )(ingredients, ingredients, ingredients)
    return out_flat.reshape(bs, h, w, 5)     # free row-major reshape


def _forward_planar(ingredients):
    # TODO(synk): fallback does the channel interleave in XLA (one extra HBM
    # pass); the fused path above writes the final layout directly.
    bs, h, w = ingredients.shape
    grid, in_specs, cparams, b_tile, h_tile = _build_specs(bs, h, w, ingredients.dtype)
    plane = jax.ShapeDtypeStruct((bs, h, w), jnp.float32)
    plane_spec = pl.BlockSpec((b_tile, h_tile, w), lambda b, i: (b, i, 0))
    planes = pl.pallas_call(
        _graph_kernel_planar,
        out_shape=(plane, plane, plane, plane, plane),
        grid_spec=pltpu.PrefetchScalarGridSpec(
            num_scalar_prefetch=0,
            grid=grid,
            in_specs=in_specs,
            out_specs=[plane_spec] * 5,
        ),
        compiler_params=cparams,
    )(ingredients, ingredients, ingredients)
    return jnp.stack(planes, axis=-1)


_FUSED_OK = None   # None = untested, True/False after the first probe


def graph_forward(ingredients):
    """Equivalent of Graph.forward: (bs, h, w) -> (bs, h, w, 5) float32."""
    global _FUSED_OK
    if _FUSED_OK is not False:
        try:
            out = _forward_fused(ingredients)
            if _FUSED_OK is None:
                jax.block_until_ready(out)   # surface lowering/runtime errors once
                _FUSED_OK = True
            return out
        except Exception:
            _FUSED_OK = False                # Mosaic rejected the minor-dim merge
    return _forward_planar(ingredients)


# ----------------------------------------------------------------------------
# Pure-JAX reference (mirrors the PyTorch loop semantics) for validation
# ----------------------------------------------------------------------------
def _reference(ingredients):
    x = ingredients.astype(jnp.float32)
    up = jnp.concatenate([x[:, :1, :], x[:, :-1, :]], axis=1)
    right = jnp.concatenate([x[:, :, 1:], x[:, :, -1:]], axis=2)
    down = jnp.concatenate([x[:, 1:, :], x[:, -1:, :]], axis=1)
    left = jnp.concatenate([x[:, :, :1], x[:, :, :-1]], axis=2)
    return jnp.stack([x, up, right, down, left], axis=-1)


if __name__ == "__main__":
    key = jax.random.PRNGKey(0)
    k_param, k_in = jax.random.split(key)

    params = init_graph_params(k_param)   # unused in forward, per the module
    _ = get_class_vertices(params)

    bs, h, w = 2, 16, 16
    ingredients = jax.random.normal(k_in, (bs, h, w), jnp.float32)

    out = jax.block_until_ready(graph_forward(ingredients))

    ref = _reference(ingredients)
    assert out.shape == (bs, h, w, 5), out.shape
    assert out.dtype == jnp.float32
    assert jnp.array_equal(out, ref), "mismatch vs reference"

    print("KERNEL_OK")
</pallas_src>

<mosaic_0001>
module attributes {stable_mosaic.version = 11 : i64} {
  func.func @_graph_kernel_fused(%arg0: i32, %arg1: i32, %arg2: memref<1x8x16xf32, #tpu.memory_space<vmem>>, %arg3: memref<1x16x16xf32, #tpu.memory_space<vmem>>, %arg4: memref<1x8x16xf32, #tpu.memory_space<vmem>>, %arg5: memref<1x16x80xf32, #tpu.memory_space<vmem>>) attributes {dimension_semantics = [#tpu.dimension_semantics<parallel>, #tpu.dimension_semantics<parallel>], iteration_bounds = array<i64: 2, 1>, scalar_prefetch = 0 : i64, scratch_operands = 0 : i64, tpu.core_type = #tpu.core_type<tc>, window_params = [{transform_indices = @transform_0, window_bounds = array<i64: 1, 8, 16>}, {transform_indices = @transform_1, window_bounds = array<i64: 1, 16, 16>}, {transform_indices = @transform_2, window_bounds = array<i64: 1, 8, 16>}, {transform_indices = @transform_3, window_bounds = array<i64: 1, 16, 80>}]} {
    %c0 = arith.constant 0 : index
    %c0_0 = arith.constant 0 : index
    %c0_1 = arith.constant 0 : index
    %0 = vector.load %arg3[%c0, %c0_0, %c0_1] : memref<1x16x16xf32, #tpu.memory_space<vmem>>, vector<1x16x16xf32>
    %c0_i32 = arith.constant 0 : i32
    %1 = arith.cmpi eq, %arg1, %c0_i32 : i32
    %2 = vector.extract_strided_slice %0 {offsets = [0, 0, 0], sizes = [1, 1, 16], strides = [1, 1, 1]} : vector<1x16x16xf32> to vector<1x1x16xf32>
    %c0_2 = arith.constant 0 : index
    %c7 = arith.constant 7 : index
    %c0_3 = arith.constant 0 : index
    %3 = vector.load %arg2[%c0_2, %c7, %c0_3] : memref<1x8x16xf32, #tpu.memory_space<vmem>>, vector<1x1x16xf32>
    %4 = arith.select %1, %2, %3 : vector<1x1x16xf32>
    %c0_i32_4 = arith.constant 0 : i32
    %5 = arith.cmpi eq, %arg1, %c0_i32_4 : i32
    %6 = vector.extract_strided_slice %0 {offsets = [0, 15, 0], sizes = [1, 1, 16], strides = [1, 1, 1]} : vector<1x16x16xf32> to vector<1x1x16xf32>
    %c0_5 = arith.constant 0 : index
    %c0_6 = arith.constant 0 : index
    %c0_7 = arith.constant 0 : index
    %7 = vector.load %arg4[%c0_5, %c0_6, %c0_7] : memref<1x8x16xf32, #tpu.memory_space<vmem>>, vector<1x1x16xf32>
    %8 = arith.select %5, %6, %7 : vector<1x1x16xf32>
    %9 = tpu.iota {dimensions = array<i32: 2>} : vector<1x16x16xi32>
    %c0_i32_8 = arith.constant 0 : i32
    %10 = vector.broadcast %c0_i32_8 : i32 to vector<1x16x16xi32>
    %11 = arith.cmpi eq, %9, %10 : vector<1x16x16xi32>
    %c1_i32 = arith.constant 1 : i32
    %12 = tpu.dynamic_rotate %0 by %c1_i32 dim 2 : vector<1x16x16xf32>, i32 -> vector<1x16x16xf32>
    %13 = arith.select %11, %0, %12 : vector<1x16x16xi1>, vector<1x16x16xf32>
    %c15_i32 = arith.constant 15 : i32
    %14 = vector.broadcast %c15_i32 : i32 to vector<1x16x16xi32>
    %15 = arith.cmpi eq, %9, %14 : vector<1x16x16xi32>
    %c15_i32_9 = arith.constant 15 : i32
    %16 = tpu.dynamic_rotate %0 by %c15_i32_9 dim 2 : vector<1x16x16xf32>, i32 -> vector<1x16x16xf32>
    %17 = arith.select %15, %0, %16 : vector<1x16x16xi1>, vector<1x16x16xf32>
    %18 = vector.extract_strided_slice %0 {offsets = [0, 0, 0], sizes = [1, 15, 16], strides = [1, 1, 1]} : vector<1x16x16xf32> to vector<1x15x16xf32>
    %19 = tpu.concatenate %4, %18 in 1 : vector<1x1x16xf32>, vector<1x15x16xf32> -> vector<1x16x16xf32>
    %20 = vector.extract_strided_slice %0 {offsets = [0, 1, 0], sizes = [1, 15, 16], strides = [1, 1, 1]} : vector<1x16x16xf32> to vector<1x15x16xf32>
    %21 = tpu.concatenate %20, %8 in 1 : vector<1x15x16xf32>, vector<1x1x16xf32> -> vector<1x16x16xf32>
    %22 = vector.shape_cast %0 : vector<1x16x16xf32> to vector<1x16x16x1xf32>
    %23 = vector.shape_cast %19 : vector<1x16x16xf32> to vector<1x16x16x1xf32>
    %24 = vector.shape_cast %17 : vector<1x16x16xf32> to vector<1x16x16x1xf32>
    %25 = vector.shape_cast %21 : vector<1x16x16xf32> to vector<1x16x16x1xf32>
    %26 = vector.shape_cast %13 : vector<1x16x16xf32> to vector<1x16x16x1xf32>
    %27 = tpu.concatenate %22, %23, %24, %25, %26 in 3 : vector<1x16x16x1xf32>, vector<1x16x16x1xf32>, vector<1x16x16x1xf32>, vector<1x16x16x1xf32>, vector<1x16x16x1xf32> -> vector<1x16x16x5xf32>
    %28 = vector.shape_cast %27 : vector<1x16x16x5xf32> to vector<1x16x80xf32>
    %c0_10 = arith.constant 0 : index
    %c0_11 = arith.constant 0 : index
    %c0_12 = arith.constant 0 : index
    %29 = vector.load %arg5[%c0_10, %c0_11, %c0_12] : memref<1x16x80xf32, #tpu.memory_space<vmem>>, vector<1x16x80xf32>
    tpu.vector_store %arg5[%c0_10, %c0_11, %c0_12], %28 {strides = array<i32>} : memref<1x16x80xf32, #tpu.memory_space<vmem>>, vector<1x16x80xf32>,
    return
  }
  func.func @transform_0(%arg0: i32, %arg1: i32) -> (i32, i32, i32) {
    %c2_i32 = arith.constant 2 : i32
    %0 = arith.muli %arg1, %c2_i32 : i32
    %c1_i32 = arith.constant 1 : i32
    %1 = arith.subi %0, %c1_i32 : i32
    %c0_i32 = arith.constant 0 : i32
    %2 = arith.maxsi %1, %c0_i32 : i32
    %c0_i32_0 = arith.constant 0 : i32
    %c0_i32_1 = arith.constant 0 : i32
    return %arg0, %2, %c0_i32_0 : i32, i32, i32
  }
  func.func @transform_1(%arg0: i32, %arg1: i32) -> (i32, i32, i32) {
    %c0_i32 = arith.constant 0 : i32
    %c0_i32_0 = arith.constant 0 : i32
    return %arg0, %arg1, %c0_i32 : i32, i32, i32
  }
  func.func @transform_2(%arg0: i32, %arg1: i32) -> (i32, i32, i32) {
    %c1_i32 = arith.constant 1 : i32
    %0 = arith.addi %arg1, %c1_i32 : i32
    %c2_i32 = arith.constant 2 : i32
    %1 = arith.muli %0, %c2_i32 : i32
    %c1_i32_0 = arith.constant 1 : i32
    %2 = arith.minsi %1, %c1_i32_0 : i32
    %c0_i32 = arith.constant 0 : i32
    %c0_i32_1 = arith.constant 0 : i32
    return %arg0, %2, %c0_i32 : i32, i32, i32
  }
  func.func @transform_3(%arg0: i32, %arg1: i32) -> (i32, i32, i32) {
    %c0_i32 = arith.constant 0 : i32
    %c0_i32_0 = arith.constant 0 : i32
    return %arg0, %arg1, %c0_i32 : i32, i32, i32
  }
}

module attributes {stable_mosaic.version = 11 : i64} {
  func.func @_graph_kernel_planar(%arg0: i32, %arg1: i32, %arg2: memref<1x8x16xf32, #tpu.memory_space<vmem>>, %arg3: memref<1x16x16xf32, #tpu.memory_space<vmem>>, %arg4: memref<1x8x16xf32, #tpu.memory_space<vmem>>, %arg5: memref<1x16x16xf32, #tpu.memory_space<vmem>>, %arg6: memref<1x16x16xf32, #tpu.memory_space<vmem>>, %arg7: memref<1x16x16xf32, #tpu.memory_space<vmem>>, %arg8: memref<1x16x16xf32, #tpu.memory_space<vmem>>, %arg9: memref<1x16x16xf32, #tpu.memory_space<vmem>>) attributes {dimension_semantics = [#tpu.dimension_semantics<parallel>, #tpu.dimension_semantics<parallel>], iteration_bounds = array<i64: 2, 1>, scalar_prefetch = 0 : i64, scratch_operands = 0 : i64, tpu.core_type = #tpu.core_type<tc>, window_params = [{transform_indices = @transform_0, window_bounds = array<i64: 1, 8, 16>}, {transform_indices = @transform_1, window_bounds = array<i64: 1, 16, 16>}, {transform_indices = @transform_2, window_bounds = array<i64: 1, 8, 16>}, {transform_indices = @transform_3, window_bounds = array<i64: 1, 16, 16>}, {transform_indices = @transform_4, window_bounds = array<i64: 1, 16, 16>}, {transform_indices = @transform_5, window_bounds = array<i64: 1, 16, 16>}, {transform_indices = @transform_6, window_bounds = array<i64: 1, 16, 16>}, {transform_indices = @transform_7, window_bounds = array<i64: 1, 16, 16>}]} {
    %c0 = arith.constant 0 : index
    %c0_0 = arith.constant 0 : index
    %c0_1 = arith.constant 0 : index
    %0 = vector.load %arg3[%c0, %c0_0, %c0_1] : memref<1x16x16xf32, #tpu.memory_space<vmem>>, vector<1x16x16xf32>
    %c0_i32 = arith.constant 0 : i32
    %1 = arith.cmpi eq, %arg1, %c0_i32 : i32
    %2 = vector.extract_strided_slice %0 {offsets = [0, 0, 0], sizes = [1, 1, 16], strides = [1, 1, 1]} : vector<1x16x16xf32> to vector<1x1x16xf32>
    %c0_2 = arith.constant 0 : index
    %c7 = arith.constant 7 : index
    %c0_3 = arith.constant 0 : index
    %3 = vector.load %arg2[%c0_2, %c7, %c0_3] : memref<1x8x16xf32, #tpu.memory_space<vmem>>, vector<1x1x16xf32>
    %4 = arith.select %1, %2, %3 : vector<1x1x16xf32>
    %c0_i32_4 = arith.constant 0 : i32
    %5 = arith.cmpi eq, %arg1, %c0_i32_4 : i32
    %6 = vector.extract_strided_slice %0 {offsets = [0, 15, 0], sizes = [1, 1, 16], strides = [1, 1, 1]} : vector<1x16x16xf32> to vector<1x1x16xf32>
    %c0_5 = arith.constant 0 : index
    %c0_6 = arith.constant 0 : index
    %c0_7 = arith.constant 0 : index
    %7 = vector.load %arg4[%c0_5, %c0_6, %c0_7] : memref<1x8x16xf32, #tpu.memory_space<vmem>>, vector<1x1x16xf32>
    %8 = arith.select %5, %6, %7 : vector<1x1x16xf32>
    %9 = vector.extract_strided_slice %0 {offsets = [0, 0, 0], sizes = [1, 16, 1], strides = [1, 1, 1]} : vector<1x16x16xf32> to vector<1x16x1xf32>
    %10 = vector.extract_strided_slice %0 {offsets = [0, 0, 0], sizes = [1, 16, 15], strides = [1, 1, 1]} : vector<1x16x16xf32> to vector<1x16x15xf32>
    %11 = tpu.concatenate %9, %10 in 2 : vector<1x16x1xf32>, vector<1x16x15xf32> -> vector<1x16x16xf32>
    %12 = vector.extract_strided_slice %0 {offsets = [0, 0, 1], sizes = [1, 16, 15], strides = [1, 1, 1]} : vector<1x16x16xf32> to vector<1x16x15xf32>
    %13 = vector.extract_strided_slice %0 {offsets = [0, 0, 15], sizes = [1, 16, 1], strides = [1, 1, 1]} : vector<1x16x16xf32> to vector<1x16x1xf32>
    %14 = tpu.concatenate %12, %13 in 2 : vector<1x16x15xf32>, vector<1x16x1xf32> -> vector<1x16x16xf32>
    %15 = vector.extract_strided_slice %0 {offsets = [0, 0, 0], sizes = [1, 15, 16], strides = [1, 1, 1]} : vector<1x16x16xf32> to vector<1x15x16xf32>
    %16 = tpu.concatenate %4, %15 in 1 : vector<1x1x16xf32>, vector<1x15x16xf32> -> vector<1x16x16xf32>
    %17 = vector.extract_strided_slice %0 {offsets = [0, 1, 0], sizes = [1, 15, 16], strides = [1, 1, 1]} : vector<1x16x16xf32> to vector<1x15x16xf32>
    %18 = tpu.concatenate %17, %8 in 1 : vector<1x15x16xf32>, vector<1x1x16xf32> -> vector<1x16x16xf32>
    %c0_8 = arith.constant 0 : index
    %c0_9 = arith.constant 0 : index
    %c0_10 = arith.constant 0 : index
    %19 = vector.load %arg5[%c0_8, %c0_9, %c0_10] : memref<1x16x16xf32, #tpu.memory_space<vmem>>, vector<1x16x16xf32>
    tpu.vector_store %arg5[%c0_8, %c0_9, %c0_10], %0 {strides = array<i32>} : memref<1x16x16xf32, #tpu.memory_space<vmem>>, vector<1x16x16xf32>,
    %c0_11 = arith.constant 0 : index
    %c0_12 = arith.constant 0 : index
    %c0_13 = arith.constant 0 : index
    %20 = vector.load %arg6[%c0_11, %c0_12, %c0_13] : memref<1x16x16xf32, #tpu.memory_space<vmem>>, vector<1x16x16xf32>
    tpu.vector_store %arg6[%c0_11, %c0_12, %c0_13], %16 {strides = array<i32>} : memref<1x16x16xf32, #tpu.memory_space<vmem>>, vector<1x16x16xf32>,
    %c0_14 = arith.constant 0 : index
    %c0_15 = arith.constant 0 : index
    %c0_16 = arith.constant 0 : index
    %21 = vector.load %arg7[%c0_14, %c0_15, %c0_16] : memref<1x16x16xf32, #tpu.memory_space<vmem>>, vector<1x16x16xf32>
    tpu.vector_store %arg7[%c0_14, %c0_15, %c0_16], %14 {strides = array<i32>} : memref<1x16x16xf32, #tpu.memory_space<vmem>>, vector<1x16x16xf32>,
    %c0_17 = arith.constant 0 : index
    %c0_18 = arith.constant 0 : index
    %c0_19 = arith.constant 0 : index
    %22 = vector.load %arg8[%c0_17, %c0_18, %c0_19] : memref<1x16x16xf32, #tpu.memory_space<vmem>>, vector<1x16x16xf32>
    tpu.vector_store %arg8[%c0_17, %c0_18, %c0_19], %18 {strides = array<i32>} : memref<1x16x16xf32, #tpu.memory_space<vmem>>, vector<1x16x16xf32>,
    %c0_20 = arith.constant 0 : index
    %c0_21 = arith.constant 0 : index
    %c0_22 = arith.constant 0 : index
    %23 = vector.load %arg9[%c0_20, %c0_21, %c0_22] : memref<1x16x16xf32, #tpu.memory_space<vmem>>, vector<1x16x16xf32>
    tpu.vector_store %arg9[%c0_20, %c0_21, %c0_22], %11 {strides = array<i32>} : memref<1x16x16xf32, #tpu.memory_space<vmem>>, vector<1x16x16xf32>,
    return
  }
  func.func @transform_0(%arg0: i32, %arg1: i32) -> (i32, i32, i32) {
    %c2_i32 = arith.constant 2 : i32
    %0 = arith.muli %arg1, %c2_i32 : i32
    %c1_i32 = arith.constant 1 : i32
    %1 = arith.subi %0, %c1_i32 : i32
    %c0_i32 = arith.constant 0 : i32
    %2 = arith.maxsi %1, %c0_i32 : i32
    %c0_i32_0 = arith.constant 0 : i32
    %c0_i32_1 = arith.constant 0 : i32
    return %arg0, %2, %c0_i32_0 : i32, i32, i32
  }
  func.func @transform_1(%arg0: i32, %arg1: i32) -> (i32, i32, i32) {
    %c0_i32 = arith.constant 0 : i32
    %c0_i32_0 = arith.constant 0 : i32
    return %arg0, %arg1, %c0_i32 : i32, i32, i32
  }
  func.func @transform_2(%arg0: i32, %arg1: i32) -> (i32, i32, i32) {
    %c1_i32 = arith.constant 1 : i32
    %0 = arith.addi %arg1, %c1_i32 : i32
    %c2_i32 = arith.constant 2 : i32
    %1 = arith.muli %0, %c2_i32 : i32
    %c1_i32_0 = arith.constant 1 : i32
    %2 = arith.minsi %1, %c1_i32_0 : i32
    %c0_i32 = arith.constant 0 : i32
    %c0_i32_1 = arith.constant 0 : i32
    return %arg0, %2, %c0_i32 : i32, i32, i32
  }
  func.func @transform_3(%arg0: i32, %arg1: i32) -> (i32, i32, i32) {
    %c0_i32 = arith.constant 0 : i32
    %c0_i32_0 = arith.constant 0 : i32
    return %arg0, %arg1, %c0_i32 : i32, i32, i32
  }
  func.func @transform_4(%arg0: i32, %arg1: i32) -> (i32, i32, i32) {
    %c0_i32 = arith.constant 0 : i32
    %c0_i32_0 = arith.constant 0 : i32
    return %arg0, %arg1, %c0_i32 : i32, i32, i32
  }
  func.func @transform_5(%arg0: i32, %arg1: i32) -> (i32, i32, i32) {
    %c0_i32 = arith.constant 0 : i32
    %c0_i32_0 = arith.constant 0 : i32
    return %arg0, %arg1, %c0_i32 : i32, i32, i32
  }
  func.func @transform_6(%arg0: i32, %arg1: i32) -> (i32, i32, i32) {
    %c0_i32 = arith.constant 0 : i32
    %c0_i32_0 = arith.constant 0 : i32
    return %arg0, %arg1, %c0_i32 : i32, i32, i32
  }
  func.func @transform_7(%arg0: i32, %arg1: i32) -> (i32, i32, i32) {
    %c0_i32 = arith.constant 0 : i32
    %c0_i32_0 = arith.constant 0 : i32
    return %arg0, %arg1, %c0_i32 : i32, i32, i32
  }
}

</mosaic_0001>

<bundles_post_ra>
// kernel: tpu_custom_call.1
= control target key start
LH: loop header
LB: loop body
LE: loop exit
PB: predicated region body
PF: predicated region fallthrough
CT: control target
= control target key end

     0   :  { %s3913_s0 = inlined_call_operand.hbm [shape: f32[2,16,16], index: 0, kind: input, shape index: {}]   ;;  %s3914_s1 = inlined_call_operand.hbm [shape: f32[2,16,16], index: 1, kind: input, shape index: {}]   ;;  %s3915_s2 = inlined_call_operand.hbm [shape: f32[2,16,16], index: 2, kind: input, shape index: {}]   ;;  %s3916_s3 = inlined_call_operand.hbm [shape: f32[2,16,80], index: 3, kind: output, shape index: {}]  }
   0x1   :  { %3924 = sst [smem:[#allocation87_spill]] %s3914_s1 }
   0x2   :  { %8 = vsyncpa [#allocation3], 0 }
   0x3   :  { %10 = vsyncpa [#allocation3 + $0x1], 0 }
   0x4   :  { %11 = vsyncpa [#allocation6], 0 }
   0x5   :  { %13 = vsyncpa [#allocation6 + $0x1], 0 }
   0x6   :  { %14 = vsyncpa [#allocation4], 0 }
   0x7   :  { %16 = vsyncpa [#allocation4 + $0x1], 0  ;;  %s2609_s12 = smov 0   ;;  %s2611_s13 = smov 0  }
   0x8   :  { %s2613_s14 = smov 0   ;;  %s2615_s15 = smov 0  }
   0x9   :  { %s2617_s16 = smov 0   ;;  %s2619_s17 = smov 0  }
   0xa LB: > { %3925 = sst [smem:[#allocation12_spill]] %s2555_s16  ;;  %s2640_s18 = sadd.s32 4294967295, %s2559_s17   ;;  %s2559_s17 = sphi %s2619_s17, %s22_s17   ;;  %s2555_s16 = sphi %s2617_s16, %s4090_s16   ;;  %s2551_s15 = sphi %s2615_s15, %s4089_s15   ;;  %s2547_s14 = sphi %s2613_s14, %s4093_s14   ;;  %s2543_s13 = sphi %s2611_s13, %s4092_s13   ;;  %s2539_s12 = sphi %s2609_s12, %s4091_s12  }
   0xb   : > { %s2259_s19 = sadd.s32 4294967294, %s2559_s17   ;;  %s34_s20 = sadd.s32 1, %s2555_s16 }
   0xc   : > { %s51_s21 = sadd.s32 1, %s2547_s14  ;;  %p36_p0 = scmp.ge.s32.totalorder %s34_s20, 2 }
   0xd   : > { %p58_p1 = scmp.ne.s32.totalorder %s2547_s14, %s2543_s13  ;;  %p59_p2 = scmp.eq.s32.totalorder %s2559_s17, 0 }
   0xe   : > { %p64_p3 = scmp.ne.s32.totalorder %s2543_s13, %s2539_s12  ;;  %s4095_s20 = smov (%p36_p0, %s34_s20), 0 }
   0xf   : > { %3926 = sst [smem:[#allocation13_spill]] %s4095_s20  ;;  %p2652_p4 = por %p59_p2, %p58_p1 }
  0x10   : > { %p65_p5 = scmp.eq.s32.totalorder %s2640_s18, 0  ;;  %s46_s23 = ssub.s32 %s2555_s16, %s4095_s20 }
  0x11   : > { %p154_p6 = scmp.eq.s32.totalorder %s2640_s18, 1  ;;  %p49_p7 = scmp.eq.s32.totalorder %s46_s23, 0 }
  0x12   : > { %p2660_p8 = por %p65_p5, %p64_p3  ;;  %p160_p10 = scmp.eq.s32.totalorder %s2259_s19, 1 }
  0x13   : > { %p2664_p9 = por %p154_p6, %p58_p1  ;;  %p2309_p13 = scmp.lt.s32.totalorder %s2559_s17, 2 }
  0x14   : > { %s3928_s24 = scalar_select %p2660_p8, 1, 0 }
  0x15   : > { %s3929_s25 = scalar_select %p2664_p9, 1, 0 }
  0x16   : > { %s2669_s26 = scalar_select %p49_p7, %s2547_s14, %s51_s21  }
  0x17   : > { %p2671_p11 = por %p160_p10, %p64_p3  ;;  %s2678_s28 = sand.u32 1, %s2547_s14  }
  0x18   : > { %3930 = sst [smem:[#allocation14_spill]] %s2669_s26  ;;  %s2681_s29 = sshll.u32 %s2555_s16, 8 }
  0x19   : > { %s3931_s27 = scalar_select %p2671_p11, 1, 0 }
  0x1a   : > { %s204_s30 = sand.u32 1, %s2559_s17   ;;  %p2686_p0 = pnand %p2309_p13, %p2652_p4 }
  0x1b   : > { %s2265_s5 = sshll.u32 %s2678_s28, 4  ;;  %s3933_s1 = sld [smem:[#allocation87_spill]] }
  0x1c   : > { %s3932_s4 = scalar_select %p2686_p0, 1, 0 }
  0x1d   : > { %s208_s9 = scalar_lea.vmem [#allocation5], %s2265_s5  ;;  %s2699_s11 = scalar_lea.sflag [#allocation6], %s204_s30 }
  0x1e   : > { %s217_s10 = sshll.u32 %s208_s9, 4  ;;  %p2705_p2 = pneg %p2686_p0  ;;  %s2697_s10 = int_to_ptr.vmem [resolvable:$true] %s217_s10 }
  0x21   : > { %s2695_s8 = scalar_lea.hbm %s3933_s1, %s2681_s29  ;;  %s2388_s5 = scalar_lea.hbm %s3933_s1, 512 }
  0x22   : > { %s2383_s19 = scalar_lea.hbm %s2695_s8, 256  ;;  %p2389_p5 = scmp.lt.u32.totalorder %s2695_s8, %s3933_s1 }
  0x23   : > { %p2384_p1 = scmp.ne.s32.totalorder %s2695_s8, %s2383_s19  ;;  %p2390_p6 = scmp.lt.u32.totalorder %s2388_s5, %s2383_s19 }
  0x24   : > { %p2392_p10 = scmp.lt.u32.totalorder %s2383_s19, %s2695_s8 }
  0x25   : > { %p2386_p3 = pnand %p2705_p2, %p2384_p1  ;;  %p2391_p7 = por %p2390_p6, %p2389_p5 }
  0x27   : > { %p2387_p4 = pneg %p2386_p3  ;;  %p2393_p13 = por %p2392_p10, %p2391_p7 }
  0x29   : > { %p2394_p12 = pnand %p2393_p13, %p2387_p4 }
  0x2b   : > { %2397 = shalt.err (!%p2394_p12)
}
  0x2c   : > { %s2398_s30 = scalar_lea.vmem %s2697_s10, 256  ;;  %s2561_s9 = smov [#allocation5]  }
  0x2d   : > { %p2399_p1 = scmp.ne.s32.totalorder %s2697_s10, %s2398_s30  ;;  %s2403_s22 = sshll.u32 %s2561_s9, 4  ;;  %s2404_s22 = int_to_ptr.vmem [resolvable:$false] %s2403_s22 }
  0x2e   : > { %s2405_s23 = scalar_lea.vmem %s2404_s22, 512  ;;  %p2406_p9 = scmp.lt.s32.totalorder %s2697_s10, %s2404_s22 }
  0x2f   : > { %p2401_p3 = pnand %p2399_p1, %p2705_p2  ;;  %p2407_p8 = scmp.lt.s32.totalorder %s2405_s23, %s2398_s30 }
  0x31   : > { %p2402_p11 = pneg %p2401_p3  ;;  %p2408_p5 = por %p2407_p8, %p2406_p9 }
  0x33   : > { %p2409_p6 = pnand %p2408_p5, %p2402_p11 }
  0x35   : > { %2412 = shalt.err (!%p2409_p6)
}
  0x36   : > { %s2562_s19 = smov 128   ;;  %s2563_s5 = smov 8  }
  0x37   : > { %2301 = dma.hbm_to_vmem [thread:$0]  (!%p2686_p0), %s2695_s8, 256, %s2697_s10, %s2699_s11, %s2562_s19, %s2562_s19, %s2563_s5  }
  0x38   : > { %p2271_p12 = scmp.ge.s32.totalorder %s2559_s17, 1  ;;  %p249_p8 = scmp.lt.s32.totalorder %s2559_s17, 3 }
  0x39   : > { %s3921_s7 = sshll.u32 %s2678_s28, 3  ;;  %s2740_s22 = scalar_lea.hbm %s3913_s0, %s2681_s29 }
  0x3a   : > { %p2731_p9 = pnand %p2271_p12, %p249_p8  ;;  %s184_s23 = scalar_lea.vmem [#allocation2], %s3921_s7 }
  0x3b   : > { %s197_s1 = sshll.u32 %s184_s23, 4  ;;  %s2284_s8 = sadd.s32 128, %s2681_s29  ;;  %s2745_s1 = int_to_ptr.vmem [resolvable:$true] %s197_s1 }
  0x3c   : > { %s3935_s6 = scalar_select %p2731_p9, 1, 0 }
  0x3d   : > { %s2750_s5 = scalar_lea.hbm %s3915_s2, %s2284_s8  ;;  %s181_s20 = scalar_lea.sflag [#allocation3], %s2678_s28 }
  0x3e   : > { %s2413_s16 = scalar_lea.hbm %s2740_s22, 128  ;;  %s2418_s26 = scalar_lea.hbm %s3913_s0, 512 }
  0x3f   : > { %p2414_p11 = scmp.ne.s32.totalorder %s2740_s22, %s2413_s16  ;;  %p2419_p10 = scmp.lt.u32.totalorder %s2740_s22, %s3913_s0 }
  0x40   : > { %p2420_p13 = scmp.lt.u32.totalorder %s2418_s26, %s2413_s16  ;;  %p2422_p3 = scmp.lt.u32.totalorder %s2413_s16, %s2740_s22 }
  0x41   : > { %p2416_p4 = pnand %p2414_p11, %p2705_p2 }
  0x42   : > { %p2421_p1 = por %p2420_p13, %p2419_p10 }
  0x43   : > { %p2417_p7 = pneg %p2416_p4 }
  0x44   : > { %p2423_p5 = por %p2422_p3, %p2421_p1 }
  0x46   : > { %p2424_p6 = pnand %p2423_p5, %p2417_p7 }
  0x48   : > { %2427 = shalt.err (!%p2424_p6)
}
  0x49   : > { %s2428_s29 = scalar_lea.vmem %s2745_s1, 128  ;;  %s2564_s8 = smov [#allocation2]  }
  0x4a   : > { %p2429_p12 = scmp.ne.s32.totalorder %s2745_s1, %s2428_s29  ;;  %s2433_s10 = sshll.u32 %s2564_s8, 4  ;;  %s2434_s10 = int_to_ptr.vmem [resolvable:$false] %s2433_s10 }
  0x4b   : > { %s2435_s7 = scalar_lea.vmem %s2434_s10, 256  ;;  %p2436_p4 = scmp.lt.s32.totalorder %s2745_s1, %s2434_s10 }
  0x4c   : > { %p2431_p8 = pnand %p2429_p12, %p2705_p2  ;;  %p2437_p9 = scmp.lt.s32.totalorder %s2435_s7, %s2428_s29 }
  0x4e   : > { %p2432_p11 = pneg %p2431_p8  ;;  %p2438_p10 = por %p2437_p9, %p2436_p4 }
  0x50   : > { %p2439_p13 = pnand %p2438_p10, %p2432_p11 }
  0x52   : > { %2442 = shalt.err (!%p2439_p13)
}
  0x53   : > { %2298 = dma.hbm_to_vmem [thread:$0]  (!%p2686_p0), %s2740_s22, 128, %s2745_s1, %s181_s20  }
  0x54   : > { %s3936_s16 = sshll.u32 %s2678_s28, 3  ;;  %s2443_s30 = scalar_lea.hbm %s2750_s5, 128 }
  0x55   : > { %s231_s26 = scalar_lea.vmem [#allocation7], %s3936_s16  ;;  %p2444_p7 = scmp.ne.s32.totalorder %s2750_s5, %s2443_s30 }
  0x56   : > { %s244_s19 = sshll.u32 %s231_s26, 4  ;;  %s2448_s29 = scalar_lea.hbm %s3915_s2, 512  ;;  %s245_s19 = int_to_ptr.vmem [resolvable:$true] %s244_s19 }
  0x57   : > { %p2446_p9 = pnand %p2444_p7, %p2705_p2  ;;  %p2449_p3 = scmp.lt.u32.totalorder %s2750_s5, %s3915_s2 }
  0x58   : > { %p2450_p5 = scmp.lt.u32.totalorder %s2448_s29, %s2443_s30  ;;  %p2452_p12 = scmp.lt.u32.totalorder %s2443_s30, %s2750_s5 }
  0x59   : > { %p2447_p1 = pneg %p2446_p9 }
  0x5a   : > { %p2451_p6 = por %p2450_p5, %p2449_p3 }
  0x5c   : > { %p2453_p8 = por %p2452_p12, %p2451_p6 }
  0x5e   : > { %p2454_p11 = pnand %p2453_p8, %p2447_p1 }
  0x60   : > { %2457 = shalt.err (!%p2454_p11)
}
  0x61   : > { %s2458_s1 = scalar_lea.vmem %s245_s19, 128  ;;  %s2565_s20 = smov [#allocation7]  }
  0x62   : > { %p2459_p4 = scmp.ne.s32.totalorder %s245_s19, %s2458_s1  ;;  %s2463_s28 = sshll.u32 %s2565_s20, 4  ;;  %s2464_s28 = int_to_ptr.vmem [resolvable:$false] %s2463_s28 }
  0x63   : > { %s2465_s22 = scalar_lea.vmem %s2464_s28, 256  ;;  %p2466_p7 = scmp.lt.s32.totalorder %s245_s19, %s2464_s28 }
  0x64   : > { %p2461_p10 = pnand %p2459_p4, %p2705_p2  ;;  %p2467_p9 = scmp.lt.s32.totalorder %s2465_s22, %s2458_s1 }
  0x66   : > { %p2462_p13 = pneg %p2461_p10  ;;  %p2468_p0 = por %p2467_p9, %p2466_p7 }
  0x68   : > { %p2469_p3 = pnand %p2468_p0, %p2462_p13 }
  0x6a   : > { %2472 = shalt.err (!%p2469_p3)
}
  0x6b   : > { %p3937_p5 = scmp.ne.s32.totalorder %s3932_s4, 0  ;;  %p3938_p1 = scmp.ne.s32.totalorder %s3935_s6, 0 }
  0x6d   : > { %2304 = dma.hbm_to_vmem [thread:$0]  (!%p3937_p5), %s2750_s5, 128, %s245_s19, %s2699_s11  }
  0x6e   : > { %253 = sbr.rel (%p3938_p1) target bundleno = 898 (0x382), region = 32 }
  0x75   : > { %s2797_s21 = sand.u32 1, %s2543_s13   ;;  %p3939_p2 = scmp.ne.s32.totalorder %s3928_s24, 0 }
  0x76   : > { %s256_s7 = scalar_lea.sflag [#allocation3], %s2797_s21 }
  0x77   : > { %2526 = dma.done.wait (%p3939_p2), %s256_s7, 128  }
  0x78   : > { %2528 = vsyncadd (%p3939_p2), %s256_s7, 4294967168  ;;  %s264_s4 = sand.u32 1, %s2640_s18   ;;  %s2273_s11 = sshll.u32 %s2797_s21, 4 }
  0x79   : > { %s265_s5 = scalar_lea.sflag [#allocation6], %s264_s4  ;;  %s268_s6 = scalar_lea.vmem [#allocation5], %s2273_s11 }
  0x7a   : > { %2530 = dma.done.wait (%p3939_p2), %s265_s5, 384  }
  0x7b   : > { %2532 = vsyncadd (%p3939_p2), %s265_s5, 4294966912  ;;  %v3923_v0 = vlaneseq  ;;  %v2821_v4 = vld [vmem:[%s268_s6] sm:$0xff]  ;;  %s2566_s18 = smov 16   ;;  %v2827_v6 = vld [vmem:[%s268_s6 + $0x8] sm:$0xff]  ;;  %vm370_vm0 = vcmask 1040384   ;;  %vm336_vm1 = vcmask 1047680  }
  0x7c   : > { %337 = vrot.lane.b32.xlu0 %v2821_v4, %s2566_s18  ;;  %v371_v27 = vrot.slane %v2821_v4, 7  ;;  %v372_v37 = vrot.slane %v2827_v6, 7  ;;  %v378_v55 = vrot.slane %v2821_v4, 1  ;;  %v379_v56 = vrot.slane %v2827_v6, 1  ;;  %s2567_s24 = smov 113   ;;  %s2568_s16 = smov 127  }
  0x7d   : > { %v2813_v1 = vshrl.u32 %v3923_v0, 7  ;;  %vm377_vm2 = vcmask 1046528   ;;  %vm1264_vm5 = vcmask 7168   ;;  %vm1297_vm6 = vcmask 15360   ;;  %s2571_s26 = smov 5   ;;  %s2572_s19 = smov 10  }
  0x7e   : > { %v376_v29 = vsel %vm370_vm0, %v2821_v4, %v371_v27  ;;  %v373_v39 = vsel %vm370_vm0, %v371_v27, %v372_v37  ;;  %v380_v60 = vsel %vm377_vm2, %v378_v55, %v379_v56  ;;  %vm1330_vm7 = vcmask 23552   ;;  %s2573_s30 = smov 15   ;;  %s2574_s9 = smov 20  }
  0x7f   : > { %v2816_v2 = vsub.s32 0, %v2813_v1  ;;  %v2819_v3 = vsub.s32 1, %v2813_v1  ;;  %v2832_v8 = vsub.s32 2, %v2813_v1  ;;  %v2839_v10 = vsub.s32 3, %v2813_v1  ;;  %s2575_s23 = smov 25   ;;  %s2576_s29 = smov 30  }
  0x80   : > { %340 = vrot.lane.b32.xlu0 %v2827_v6, %s2566_s18  ;;  %v2844_v12 = vsub.s32 4, %v2813_v1  ;;  %v2849_v14 = vsub.s32 5, %v2813_v1  ;;  %v2854_v16 = vsub.s32 6, %v2813_v1  ;;  %v2859_v18 = vsub.s32 7, %v2813_v1  ;;  %s2577_s8 = smov 35   ;;  %s2578_s10 = smov 40  }
  0x81   : > { %v387_v5 = vrot.slane %v2821_v4, %v2816_v2  ;;  %v398_v7 = vrot.slane %v2821_v4, %v2819_v3  ;;  %v409_v9 = vrot.slane %v2821_v4, %v2832_v8  ;;  %v420_v11 = vrot.slane %v2821_v4, %v2839_v10  ;;  %s2579_s1 = smov 45   ;;  %s2580_s20 = smov 50  }
  0x82   : > { %v431_v13 = vrot.slane %v2821_v4, %v2844_v12  ;;  %v442_v15 = vrot.slane %v2821_v4, %v2849_v14  ;;  %v453_v17 = vrot.slane %v2821_v4, %v2854_v16  ;;  %v464_v19 = vrot.slane %v2821_v4, %v2859_v18  ;;  %s2581_s28 = smov 55   ;;  %s2582_s22 = smov 60  }
  0x83   : > { %393 = vbcast.lane.b32.xlu1 %v387_v5, 264  ;;  %v475_v20 = vrot.slane %v2827_v6, %v2816_v2  ;;  %v486_v21 = vrot.slane %v2827_v6, %v2819_v3  ;;  %v497_v22 = vrot.slane %v2827_v6, %v2832_v8  ;;  %v508_v23 = vrot.slane %v2827_v6, %v2839_v10  ;;  %s2583_s7 = smov 65   ;;  %s2584_s4 = smov 70  }
  0x84   : > { %389 = vbcast.lane.b32.xlu0 %v387_v5, 256  ;;  %v519_v24 = vrot.slane %v2827_v6, %v2844_v12  ;;  %v530_v25 = vrot.slane %v2827_v6, %v2849_v14  ;;  %v541_v26 = vrot.slane %v2827_v6, %v2854_v16  ;;  %v552_v28 = vrot.slane %v2827_v6, %v2859_v18  ;;  %s2585_s5 = smov 75   ;;  %s309_s6 = scalar_lea.vmem [#allocation8], %s2273_s11 }
  0x85   : > { %v563_v30 = vrot.slane %v376_v29, %v2816_v2  ;;  %v574_v31 = vrot.slane %v376_v29, %v2819_v3  ;;  %v585_v32 = vrot.slane %v376_v29, %v2832_v8  ;;  %v596_v33 = vrot.slane %v376_v29, %v2839_v10  ;;  %s2124_s11 = sshll.u32 %s309_s6, 4  ;;  %p4085_p6 = scmp.ne.s32.totalorder %s3929_s25, 0  ;;  %s3854_s11 = int_to_ptr.vmem [resolvable:$true] %s2124_s11 }
  0x86   : > { %v607_v34 = vrot.slane %v376_v29, %v2844_v12  ;;  %v618_v35 = vrot.slane %v376_v29, %v2849_v14  ;;  %v629_v36 = vrot.slane %v376_v29, %v2854_v16  ;;  %v640_v38 = vrot.slane %v376_v29, %v2859_v18 }
  0x87   : > { %404 = vbcast.lane.b32.xlu1 %v398_v7, 264  ;;  %v651_v40 = vrot.slane %v373_v39, %v2816_v2  ;;  %v662_v41 = vrot.slane %v373_v39, %v2819_v3  ;;  %v673_v42 = vrot.slane %v373_v39, %v2832_v8  ;;  %v684_v43 = vrot.slane %v373_v39, %v2839_v10 }
  0x88   : > { %400 = vbcast.lane.b32.xlu0 %v398_v7, 256  ;;  %v695_v44 = vrot.slane %v373_v39, %v2844_v12  ;;  %v706_v46 = vrot.slane %v373_v39, %v2849_v14  ;;  %v717_v54 = vrot.slane %v373_v39, %v2854_v16  ;;  %v728_v59 = vrot.slane %v373_v39, %v2859_v18 }
  0x89   : > { %v915_v63 = vrot.slane %v380_v60, %v2816_v2  ;;  %v981_v29 = vrot.slane %v380_v60, %v2854_v16  ;;  %vm1363_vm8 = vcmask 31744   ;;  %vm2060_vm9 = vcmask 39936  }
  0x8a   : > { %vm2063_vm10 = vcmask 80896   ;;  %vm2066_vm11 = vcmask 121856   ;;  %vm2069_vm12 = vcmask 162816   ;;  %vm2072_vm13 = vcmask 203776  }
  0x8b   : > { %415 = vbcast.lane.b32.xlu1 %v409_v9, 264  ;;  %vm2075_vm14 = vcmask 244736   ;;  %vm2078_vm15 = vcmask 285696   ;;  %vm2081_vm0 = vcmask 326656  }
  0x8c   : > { %411 = vbcast.lane.b32.xlu0 %v409_v9, 256  ;;  %v926_v9 = vrot.slane %v380_v60, %v2819_v3 }
  0x8f   : > { %426 = vbcast.lane.b32.xlu1 %v420_v11, 264 }
  0x90   : > { %422 = vbcast.lane.b32.xlu0 %v420_v11, 256 }
  0x93   : > { %437 = vbcast.lane.b32.xlu1 %v431_v13, 264 }
  0x94   : > { %433 = vbcast.lane.b32.xlu0 %v431_v13, 256 }
  0x97   : > { %448 = vbcast.lane.b32.xlu1 %v442_v15, 264 }
  0x98   : > { %444 = vbcast.lane.b32.xlu0 %v442_v15, 256  ;;  %v937_v15 = vrot.slane %v380_v60, %v2832_v8 }
  0x9b   : > { %459 = vbcast.lane.b32.xlu1 %v453_v17, 264 }
  0x9c   : > { %455 = vbcast.lane.b32.xlu0 %v453_v17, 256 }
  0x9f   : > { %470 = vbcast.lane.b32.xlu1 %v464_v19, 264 }
  0xa0   : > { %466 = vbcast.lane.b32.xlu0 %v464_v19, 256 }
  0xa3   : > { %481 = vbcast.lane.b32.xlu1 %v475_v20, 264 }
  0xa4   : > { %477 = vbcast.lane.b32.xlu0 %v475_v20, 256  ;;  %v948_v20 = vrot.slane %v380_v60, %v2839_v10 }
  0xa7   : > { %492 = vbcast.lane.b32.xlu1 %v486_v21, 264 }
  0xa8   : > { %488 = vbcast.lane.b32.xlu0 %v486_v21, 256 }
  0xab   : > { %503 = vbcast.lane.b32.xlu1 %v497_v22, 264 }
  0xac   : > { %499 = vbcast.lane.b32.xlu0 %v497_v22, 256 }
  0xaf   : > { %514 = vbcast.lane.b32.xlu1 %v508_v23, 264 }
  0xb0   : > { %510 = vbcast.lane.b32.xlu0 %v508_v23, 256  ;;  %v959_v23 = vrot.slane %v380_v60, %v2844_v12 }
  0xb3   : > { %525 = vbcast.lane.b32.xlu1 %v519_v24, 264 }
  0xb4   : > { %521 = vbcast.lane.b32.xlu0 %v519_v24, 256 }
  0xb7   : > { %536 = vbcast.lane.b32.xlu1 %v530_v25, 264 }
  0xb8   : > { %532 = vbcast.lane.b32.xlu0 %v530_v25, 256 }
  0xbb   : > { %547 = vbcast.lane.b32.xlu1 %v541_v26, 264 }
  0xbc   : > { %543 = vbcast.lane.b32.xlu0 %v541_v26, 256  ;;  %v970_v26 = vrot.slane %v380_v60, %v2849_v14 }
  0xbf   : > { %558 = vbcast.lane.b32.xlu1 %v552_v28, 264 }
  0xc0   : > { %554 = vbcast.lane.b32.xlu0 %v552_v28, 256 }
  0xc3   : > { %569 = vbcast.lane.b32.xlu1 %v563_v30, 264 }
  0xc4   : > { %565 = vbcast.lane.b32.xlu0 %v563_v30, 256 }
  0xc7   : > { %580 = vbcast.lane.b32.xlu1 %v574_v31, 264 }
  0xc8   : > { %576 = vbcast.lane.b32.xlu0 %v574_v31, 256 }
  0xcb   : > { %591 = vbcast.lane.b32.xlu1 %v585_v32, 264 }
  0xcc   : > { %587 = vbcast.lane.b32.xlu0 %v585_v32, 256  ;;  %v992_v32 = vrot.slane %v380_v60, %v2859_v18 }
  0xcf   : > { %602 = vbcast.lane.b32.xlu1 %v596_v33, 264 }
  0xd0   : > { %598 = vbcast.lane.b32.xlu0 %v596_v33, 256  ;;  %v383_v33 = vsel %vm377_vm2, %v379_v56, %v2827_v6  ;;  %vm2087_vm2 = vcmask 408576  }
  0xd1   : > { %v1014_v39 = vrot.slane %v383_v33, %v2819_v3  ;;  %v1080_v56 = vrot.slane %v383_v33, %v2859_v18 }
  0xd3   : > { %613 = vbcast.lane.b32.xlu1 %v607_v34, 264 }
  0xd4   : > { %609 = vbcast.lane.b32.xlu0 %v607_v34, 256 }
  0xd7   : > { %624 = vbcast.lane.b32.xlu1 %v618_v35, 264 }
  0xd8   : > { %620 = vbcast.lane.b32.xlu0 %v618_v35, 256 }
  0xdb   : > { %635 = vbcast.lane.b32.xlu1 %v629_v36, 264 }
  0xdc   : > { %631 = vbcast.lane.b32.xlu0 %v629_v36, 256  ;;  %v1003_v36 = vrot.slane %v383_v33, %v2816_v2 }
  0xdf   : > { %646 = vbcast.lane.b32.xlu1 %v640_v38, 264 }
  0xe0   : > { %642 = vbcast.lane.b32.xlu0 %v640_v38, 256 }
  0xe3   : > { %657 = vbcast.lane.b32.xlu1 %v651_v40, 264 }
  0xe4   : > { %653 = vbcast.lane.b32.xlu0 %v651_v40, 256 }
  0xe7   : > { %668 = vbcast.lane.b32.xlu1 %v662_v41, 264 }
  0xe8   : > { %664 = vbcast.lane.b32.xlu0 %v662_v41, 256 }
  0xeb   : > { %679 = vbcast.lane.b32.xlu1 %v673_v42, 264 }
  0xec   : > { %675 = vbcast.lane.b32.xlu0 %v673_v42, 256  ;;  %v1025_v42 = vrot.slane %v383_v33, %v2832_v8 }
  0xee   : > { %v338_v45 = vpop.permute.xlu0 %337 }
  0xef   : > { %690 = vbcast.lane.b32.xlu1 %v684_v43, 264  ;;  %v339_v49 = vsel %vm336_vm1, %v338_v45, %v2821_v4  ;;  %v1036_v45 = vrot.slane %v383_v33, %v2839_v10 }
  0xf0   : > { %686 = vbcast.lane.b32.xlu0 %v684_v43, 256 }
  0xf2   : > { %v341_v48 = vpop.permute.xlu0 %340 }
  0xf3   : > { %701 = vbcast.lane.b32.xlu1 %v695_v44, 264  ;;  %v342_v52 = vsel %vm336_vm1, %v341_v48, %v2827_v6 }
  0xf4   : > { %697 = vbcast.lane.b32.xlu0 %v695_v44, 256 }
  0xf5   : > { %v2898_v47 = vpop.permute.xlu1 %393 }
  0xf6   : > { %v2904_v51 = vpop.permute.xlu0 %389 }
  0xf7   : > { %712 = vbcast.lane.b32.xlu1 %v706_v46, 264 }
  0xf8   : > { %708 = vbcast.lane.b32.xlu0 %v706_v46, 256 }
  0xf9   : > { %v2902_v50 = vpop.permute.xlu1 %404 }
  0xfa   : > { %v2914_v57 = vpop.permute.xlu0 %400 }
  0xfb   : > { %343 = vrot.lane.b32.xlu1 %v339_v49, %s2566_s18  ;;  %v1058_v49 = vrot.slane %v383_v33, %v2849_v14 }
  0xfc   : > { %719 = vbcast.lane.b32.xlu0 %v717_v54, 256 }
  0xfd   : > { %v2909_v53 = vpop.permute.xlu1 %415 }
  0xfe   : > { %v2921_v61 = vpop.permute.xlu0 %411 }
  0xff   : > { %345 = vrot.lane.b32.xlu1 %v342_v52, %s2566_s18  ;;  %v1047_v52 = vrot.slane %v383_v33, %v2844_v12  ;;  %s2285_s18 = sshll.u32 %s2551_s15, 8  ;;  %s2109_s15 = scalar_lea.sflag [#allocation4], %s2797_s21 }
 0x100   : > { %730 = vbcast.lane.b32.xlu0 %v728_v59, 256 }
 0x101   : > { %v2917_v58 = vpop.permute.xlu1 %426 }
 0x102   : > { %v2926_v5 = vpop.permute.xlu0 %422 }
 0x103   : > { %723 = vbcast.lane.b32.xlu1 %v717_v54, 264 }
 0x104   : > { %917 = vbcast.lane.b32.xlu0 %v915_v63, 256 }
 0x105   : > { %v2923_v62 = vpop.permute.xlu1 %437 }
 0x106   : > { %v2931_v11 = vpop.permute.xlu0 %433 }
 0x107   : > { %734 = vbcast.lane.b32.xlu1 %v728_v59, 264  ;;  %v1069_v59 = vrot.slane %v383_v33, %v2854_v16 }
 0x108   : > { %928 = vbcast.lane.b32.xlu0 %v926_v9, 256 }
 0x109   : > { %v2928_v7 = vpop.permute.xlu1 %448 }
 0x10a   : > { %v2936_v17 = vpop.permute.xlu0 %444 }
 0x10b   : > { %921 = vbcast.lane.b32.xlu1 %v915_v63, 264 }
 0x10c   : > { %939 = vbcast.lane.b32.xlu0 %v937_v15, 256 }
 0x10d   : > { %v2933_v13 = vpop.permute.xlu1 %459 }
 0x10e   : > { %v2941_v21 = vpop.permute.xlu0 %455 }
 0x10f   : > { %932 = vbcast.lane.b32.xlu1 %v926_v9, 264 }
 0x110   : > { %950 = vbcast.lane.b32.xlu0 %v948_v20, 256 }
 0x111   : > { %v2938_v19 = vpop.permute.xlu1 %470 }
 0x112   : > { %v2946_v24 = vpop.permute.xlu0 %466 }
 0x113   : > { %943 = vbcast.lane.b32.xlu1 %v937_v15, 264 }
 0x114   : > { %961 = vbcast.lane.b32.xlu0 %v959_v23, 256 }
 0x115   : > { %v2943_v22 = vpop.permute.xlu1 %481 }
 0x116   : > { %v2951_v27 = vpop.permute.xlu0 %477 }
 0x117   : > { %954 = vbcast.lane.b32.xlu1 %v948_v20, 264  ;;  %3940 = vst [vmem:[#allocation15_spill] sm:$0xff] %v2951_v27 }
 0x118   : > { %972 = vbcast.lane.b32.xlu0 %v970_v26, 256 }
 0x119   : > { %v2948_v25 = vpop.permute.xlu1 %492 }
 0x11a   : > { %v2956_v30 = vpop.permute.xlu0 %488 }
 0x11b   : > { %965 = vbcast.lane.b32.xlu1 %v959_v23, 264  ;;  %3942 = vst [vmem:[#allocation17_spill] sm:$0xff] %v2956_v30 }
 0x11c   : > { %983 = vbcast.lane.b32.xlu0 %v981_v29, 256 }
 0x11d   : > { %v2953_v28 = vpop.permute.xlu1 %503 }
 0x11e   : > { %3941 = vst [vmem:[#allocation16_spill] sm:$0xff] %v2953_v28  ;;  %v2963_v34 = vpop.permute.xlu0 %499 }
 0x11f   : > { %976 = vbcast.lane.b32.xlu1 %v970_v26, 264  ;;  %3944 = vst [vmem:[#allocation19_spill] sm:$0xff] %v2963_v34 }
 0x120   : > { %994 = vbcast.lane.b32.xlu0 %v992_v32, 256 }
 0x121   : > { %v2958_v31 = vpop.permute.xlu1 %514 }
 0x122   : > { %3943 = vst [vmem:[#allocation18_spill] sm:$0xff] %v2958_v31  ;;  %v2968_v37 = vpop.permute.xlu0 %510 }
 0x123   : > { %987 = vbcast.lane.b32.xlu1 %v981_v29, 264  ;;  %3946 = vst [vmem:[#allocation21_spill] sm:$0xff] %v2968_v37 }
 0x124   : > { %1005 = vbcast.lane.b32.xlu0 %v1003_v36, 256 }
 0x125   : > { %v2965_v35 = vpop.permute.xlu1 %525 }
 0x126   : > { %3945 = vst [vmem:[#allocation20_spill] sm:$0xff] %v2965_v35  ;;  %v2973_v40 = vpop.permute.xlu0 %521 }
 0x127   : > { %998 = vbcast.lane.b32.xlu1 %v992_v32, 264  ;;  %3948 = vst [vmem:[#allocation23_spill] sm:$0xff] %v2973_v40 }
 0x128   : > { %1016 = vbcast.lane.b32.xlu0 %v1014_v39, 256 }
 0x129   : > { %v2970_v38 = vpop.permute.xlu1 %536 }
 0x12a   : > { %3947 = vst [vmem:[#allocation22_spill] sm:$0xff] %v2970_v38  ;;  %v2978_v43 = vpop.permute.xlu0 %532 }
 0x12b   : > { %1009 = vbcast.lane.b32.xlu1 %v1003_v36, 264  ;;  %3950 = vst [vmem:[#allocation25_spill] sm:$0xff] %v2978_v43 }
 0x12c   : > { %1027 = vbcast.lane.b32.xlu0 %v1025_v42, 256 }
 0x12d   : > { %v2975_v41 = vpop.permute.xlu1 %547 }
 0x12e   : > { %3949 = vst [vmem:[#allocation24_spill] sm:$0xff] %v2975_v41  ;;  %v2983_v46 = vpop.permute.xlu0 %543 }
 0x12f   : > { %1020 = vbcast.lane.b32.xlu1 %v1014_v39, 264  ;;  %3952 = vst [vmem:[#allocation27_spill] sm:$0xff] %v2983_v46 }
 0x130   : > { %1038 = vbcast.lane.b32.xlu0 %v1036_v45, 256 }
 0x131   : > { %v2980_v44 = vpop.permute.xlu1 %558 }
 0x132   : > { %3951 = vst [vmem:[#allocation26_spill] sm:$0xff] %v2980_v44  ;;  %v2989_v54 = vpop.permute.xlu0 %554 }
 0x133   : > { %1031 = vbcast.lane.b32.xlu1 %v1025_v42, 264  ;;  %3953 = vst [vmem:[#allocation28_spill] sm:$0xff] %v2989_v54 }
 0x134   : > { %1060 = vbcast.lane.b32.xlu0 %v1058_v49, 256 }
 0x135   : > { %v2985_v48 = vpop.permute.xlu1 %569 }
 0x136   : > { %v2995_v60 = vpop.permute.xlu0 %565 }
 0x137   : > { %1049 = vbcast.lane.b32.xlu1 %v1047_v52, 256 }
 0x138   : > { %1082 = vbcast.lane.b32.xlu0 %v1080_v56, 256 }
 0x139   : > { %v2991_v55 = vpop.permute.xlu1 %580 }
 0x13a   : > { %v2999_v9 = vpop.permute.xlu0 %576 }
 0x13b   : > { %1071 = vbcast.lane.b32.xlu1 %v1069_v59, 256 }
 0x13c   : > { %1053 = vbcast.lane.b32.xlu0 %v1047_v52, 264 }
 0x13d   : > { %v2997_v63 = vpop.permute.xlu1 %591 }
 0x13e   : > { %v3003_v20 = vpop.permute.xlu0 %587 }
 0x13f   : > { %1042 = vbcast.lane.b32.xlu1 %v1036_v45, 264 }
 0x140   : > { %1075 = vbcast.lane.b32.xlu0 %v1069_v59, 264 }
 0x141   : > { %v3001_v15 = vpop.permute.xlu1 %602 }
 0x142   : > { %v3007_v26 = vpop.permute.xlu0 %598 }
 0x143   : > { %1064 = vbcast.lane.b32.xlu1 %v1058_v49, 264 }
 0x145   : > { %v3005_v23 = vpop.permute.xlu1 %613 }
 0x146   : > { %v3011_v32 = vpop.permute.xlu0 %609 }
 0x147   : > { %1086 = vbcast.lane.b32.xlu1 %v1080_v56, 264 }
 0x149   : > { %v3009_v29 = vpop.permute.xlu1 %624 }
 0x14a   : > { %v3015_v36 = vpop.permute.xlu0 %620 }
 0x14d   : > { %v3013_v33 = vpop.permute.xlu1 %635 }
 0x14e   : > { %v3019_v42 = vpop.permute.xlu0 %631 }
 0x151   : > { %v3017_v39 = vpop.permute.xlu1 %646 }
 0x152   : > { %v3023_v49 = vpop.permute.xlu0 %642 }
 0x155   : > { %v3021_v45 = vpop.permute.xlu1 %657 }
 0x156   : > { %v3027_v59 = vpop.permute.xlu0 %653 }
 0x159   : > { %v3025_v52 = vpop.permute.xlu1 %668 }
 0x15a   : > { %v3031_v0 = vpop.permute.xlu0 %664 }
 0x15b   : > { %3955 = vst [vmem:[#allocation30_spill] sm:$0xff] %v3031_v0 }
 0x15d   : > { %v3029_v56 = vpop.permute.xlu1 %679 }
 0x15e   : > { %3954 = vst [vmem:[#allocation29_spill] sm:$0xff] %v3029_v56  ;;  %v3035_v54 = vpop.permute.xlu0 %675 }
 0x15f   : > { %3957 = vst [vmem:[#allocation32_spill] sm:$0xff] %v3035_v54 }
 0x161   : > { %v3033_v44 = vpop.permute.xlu1 %690 }
 0x162   : > { %3956 = vst [vmem:[#allocation31_spill] sm:$0xff] %v3033_v44  ;;  %v3039_v46 = vpop.permute.xlu0 %686 }
 0x163   : > { %3959 = vst [vmem:[#allocation34_spill] sm:$0xff] %v3039_v46 }
 0x165   : > { %v3037_v41 = vpop.permute.xlu1 %701 }
 0x166   : > { %3958 = vst [vmem:[#allocation33_spill] sm:$0xff] %v3037_v41  ;;  %v3043_v40 = vpop.permute.xlu0 %697 }
 0x167   : > { %3961 = vst [vmem:[#allocation36_spill] sm:$0xff] %v3043_v40 }
 0x169   : > { %v3041_v43 = vpop.permute.xlu1 %712 }
 0x16a   : > { %3960 = vst [vmem:[#allocation35_spill] sm:$0xff] %v3041_v43  ;;  %v3047_v35 = vpop.permute.xlu0 %708 }
 0x16b   : > { %3962 = vst [vmem:[#allocation37_spill] sm:$0xff] %v3047_v35 }
 0x16d   : > { %v344_v38 = vpop.permute.xlu1 %343 }
 0x16e   : > { %v347_v37 = vsel %vm336_vm1, %v344_v38, %v2821_v4  ;;  %v3051_v46 = vpop.permute.xlu0 %719 }
 0x16f   : > { %351 = vrot.lane.b32.xlu0 %v347_v37, %s2567_s24  ;;  %3963 = vst [vmem:[#allocation38_spill] sm:$0xff] %v3051_v46 }
 0x171   : > { %v346_v34 = vpop.permute.xlu1 %345 }
 0x172   : > { %v348_v54 = vsel %vm336_vm1, %v346_v34, %v2827_v6  ;;  %v3053_v43 = vpop.permute.xlu0 %730  ;;  %vm2084_vm1 = vcmask 367616  }
 0x173   : > { %360 = vrot.lane.b32.xlu0 %v347_v37, %s2568_s16  ;;  %353 = vrot.lane.b32.xlu1 %v348_v54, %s2567_s24  ;;  %3964 = vst [vmem:[#allocation39_spill] sm:$0xff] %v3053_v43 }
 0x175   : > { %v3061_v31 = vpop.permute.xlu1 %723 }
 0x176   : > { %v3055_v40 = vpop.permute.xlu0 %917  ;;  %3968 = vst [vmem:[#allocation43_spill] sm:$0xff] %v3061_v31 }
 0x177   : > { %362 = vrot.lane.b32.xlu1 %v348_v54, %s2568_s16  ;;  %3965 = vst [vmem:[#allocation40_spill] sm:$0xff] %v3055_v40 }
 0x179   : > { %v3065_v44 = vpop.permute.xlu1 %734 }
 0x17a   : > { %v3057_v41 = vpop.permute.xlu0 %928  ;;  %3970 = vst [vmem:[#allocation45_spill] sm:$0xff] %v3065_v44 }
 0x17b   : > { %3966 = vst [vmem:[#allocation41_spill] sm:$0xff] %v3057_v41 }
 0x17d   : > { %v3069_v37 = vpop.permute.xlu1 %921 }
 0x17e   : > { %v3059_v38 = vpop.permute.xlu0 %939  ;;  %3972 = vst [vmem:[#allocation47_spill] sm:$0xff] %v3069_v37 }
 0x17f   : > { %3967 = vst [vmem:[#allocation42_spill] sm:$0xff] %v3059_v38 }
 0x181   : > { %v3073_v54 = vpop.permute.xlu1 %932 }
 0x182   : > { %v3063_v35 = vpop.permute.xlu0 %950  ;;  %3974 = vst [vmem:[#allocation49_spill] sm:$0xff] %v3073_v54 }
 0x183   : > { %3969 = vst [vmem:[#allocation44_spill] sm:$0xff] %v3063_v35 }
 0x185   : > { %v3077_v40 = vpop.permute.xlu1 %943 }
 0x186   : > { %v3067_v34 = vpop.permute.xlu0 %961  ;;  %3976 = vst [vmem:[#allocation51_spill] sm:$0xff] %v3077_v40 }
 0x187   : > { %3971 = vst [vmem:[#allocation46_spill] sm:$0xff] %v3067_v34 }
 0x189   : > { %v3081_v38 = vpop.permute.xlu1 %954 }
 0x18a   : > { %v3071_v46 = vpop.permute.xlu0 %972  ;;  %3978 = vst [vmem:[#allocation53_spill] sm:$0xff] %v3081_v38 }
 0x18b   : > { %3973 = vst [vmem:[#allocation48_spill] sm:$0xff] %v3071_v46 }
 0x18d   : > { %v3085_v35 = vpop.permute.xlu1 %965 }
 0x18e   : > { %v3075_v43 = vpop.permute.xlu0 %983  ;;  %3980 = vst [vmem:[#allocation55_spill] sm:$0xff] %v3085_v35 }
 0x18f   : > { %3975 = vst [vmem:[#allocation50_spill] sm:$0xff] %v3075_v43 }
 0x191   : > { %v3089_v34 = vpop.permute.xlu1 %976 }
 0x192   : > { %v3079_v41 = vpop.permute.xlu0 %994  ;;  %3982 = vst [vmem:[#allocation57_spill] sm:$0xff] %v3089_v34 }
 0x193   : > { %3977 = vst [vmem:[#allocation52_spill] sm:$0xff] %v3079_v41 }
 0x195   : > { %v3093_v46 = vpop.permute.xlu1 %987 }
 0x196   : > { %v3083_v31 = vpop.permute.xlu0 %1005  ;;  %3984 = vst [vmem:[#allocation59_spill] sm:$0xff] %v3093_v46 }
 0x197   : > { %3979 = vst [vmem:[#allocation54_spill] sm:$0xff] %v3083_v31 }
 0x199   : > { %v3097_v43 = vpop.permute.xlu1 %998 }
 0x19a   : > { %v3087_v44 = vpop.permute.xlu0 %1016  ;;  %3986 = vst [vmem:[#allocation61_spill] sm:$0xff] %v3097_v43 }
 0x19b   : > { %3981 = vst [vmem:[#allocation56_spill] sm:$0xff] %v3087_v44 }
 0x19d   : > { %v3101_v41 = vpop.permute.xlu1 %1009 }
 0x19e   : > { %v3091_v37 = vpop.permute.xlu0 %1027  ;;  %3988 = vst [vmem:[#allocation63_spill] sm:$0xff] %v3101_v41 }
 0x19f   : > { %3983 = vst [vmem:[#allocation58_spill] sm:$0xff] %v3091_v37  ;;  %v3994_v37 = vlaneseq }
 0x1a1   : > { %v3105_v31 = vpop.permute.xlu1 %1020  ;;  %v3114_v46 = vand.u32 127, %v3994_v37 }
 0x1a2   : > { %v3095_v54 = vpop.permute.xlu0 %1038  ;;  %3990 = vst [vmem:[#allocation65_spill] sm:$0xff] %v3105_v31 }
 0x1a3   : > { %3985 = vst [vmem:[#allocation60_spill] sm:$0xff] %v3095_v54  ;;  %vm335_vm3 = vcmp.eq.s32.totalorder %v3114_v46, 0  ;;  %vm359_vm4 = vcmp.eq.s32.totalorder %v3114_v46, 15 }
 0x1a5   : > { %v3109_v44 = vpop.permute.xlu1 %1031 }
 0x1a6   : > { %v3099_v40 = vpop.permute.xlu0 %1060  ;;  %3992 = vst [vmem:[#allocation67_spill] sm:$0xff] %v3109_v44 }
 0x1a7   : > { %3987 = vst [vmem:[#allocation62_spill] sm:$0xff] %v3099_v40 }
 0x1a9   : > { %v3116_v54 = vpop.permute.xlu1 %1049 }
 0x1aa   : > { %v3103_v38 = vpop.permute.xlu0 %1082  ;;  %3995 = vst [vmem:[#allocation69_spill] sm:$0xff] %v3116_v54 }
 0x1ab   : > { %3989 = vst [vmem:[#allocation64_spill] sm:$0xff] %v3103_v38 }
 0x1ae   : > { %v3107_v35 = vpop.permute.xlu0 %1053 }
 0x1af   : > { %3991 = vst [vmem:[#allocation66_spill] sm:$0xff] %v3107_v35  ;;  %v3125_v35 = vpop.permute.xlu1 %1071 }
 0x1b0   : > { %3996 = vst [vmem:[#allocation70_spill] sm:$0xff] %v3125_v35 }
 0x1b2   : > { %v3111_v34 = vpop.permute.xlu0 %1075 }
 0x1b3   : > { %3993 = vst [vmem:[#allocation68_spill] sm:$0xff] %v3111_v34  ;;  %v3131_v31 = vpop.permute.xlu1 %1042 }
 0x1b4   : > { %3997 = vst [vmem:[#allocation71_spill] sm:$0xff] %v3131_v31 }
 0x1b7   : > { %v3135_v40 = vpop.permute.xlu1 %1064 }
 0x1b8   : > { %3998 = vst [vmem:[#allocation72_spill] sm:$0xff] %v3135_v40 }
 0x1e1   : > { %v352_v43 = vpop.permute.xlu0 %351 }
 0x1e2   : > { %v3122_v41 = vsel %vm335_vm3, %v2821_v4, %v352_v43 }
 0x1e5   : > { %v361_v44 = vpop.permute.xlu0 %360 }
 0x1e6   : > { %v366_v37 = vsel %vm359_vm4, %v2821_v4, %v361_v44  ;;  %v3138_v4 = vpop.permute.xlu1 %1086 }
 0x1e7   : > { %v739_v34 = vrot.slane %v366_v37, %v2816_v2  ;;  %v750_v38 = vrot.slane %v366_v37, %v2819_v3  ;;  %v761_v43 = vrot.slane %v366_v37, %v2832_v8  ;;  %v772_v35 = vrot.slane %v366_v37, %v2839_v10  ;;  %3999 = vst [vmem:[#allocation73_spill] sm:$0xff] %v3138_v4 }
 0x1e8   : > { %v783_v44 = vrot.slane %v366_v37, %v2844_v12  ;;  %v794_v31 = vrot.slane %v366_v37, %v2849_v14 }
 0x1e9   : > { %745 = vbcast.lane.b32.xlu1 %v739_v34, 264  ;;  %741 = vbcast.lane.b32.xlu0 %v739_v34, 256 }
 0x1ea   : > { %v354_v34 = vpop.permute.xlu1 %353 }
 0x1eb   : > { %v358_v54 = vsel %vm335_vm3, %v2827_v6, %v354_v34  ;;  %vm2090_vm3 = vcmask 449536  }
 0x1ec   : > { %v1179_v30 = vrot.slane %v358_v54, %v2816_v2  ;;  %v1190_v0 = vrot.slane %v358_v54, %v2819_v3  ;;  %v1201_v28 = vrot.slane %v358_v54, %v2832_v8  ;;  %v1212_v56 = vrot.slane %v358_v54, %v2839_v10 }
 0x1ed   : > { %756 = vbcast.lane.b32.xlu1 %v750_v38, 264  ;;  %752 = vbcast.lane.b32.xlu0 %v750_v38, 256  ;;  %v805_v38 = vrot.slane %v366_v37, %v2854_v16  ;;  %v1234_v27 = vrot.slane %v358_v54, %v2849_v14 }
 0x1ee   : > { %v363_v40 = vpop.permute.xlu1 %362 }
 0x1f1   : > { %767 = vbcast.lane.b32.xlu1 %v761_v43, 264  ;;  %763 = vbcast.lane.b32.xlu0 %v761_v43, 256  ;;  %v816_v43 = vrot.slane %v366_v37, %v2859_v18 }
 0x1f5   : > { %778 = vbcast.lane.b32.xlu1 %v772_v35, 264  ;;  %774 = vbcast.lane.b32.xlu0 %v772_v35, 256  ;;  %v367_v35 = vsel %vm359_vm4, %v2827_v6, %v363_v40  ;;  %v1245_v6 = vrot.slane %v358_v54, %v2854_v16  ;;  %vm2093_vm4 = vcmask 490496  }
 0x1f6   : > { %v838_v4 = vrot.slane %v367_v35, %v2819_v3  ;;  %v860_v37 = vrot.slane %v367_v35, %v2839_v10  ;;  %v871_v40 = vrot.slane %v367_v35, %v2844_v12 }
 0x1f9   : > { %789 = vbcast.lane.b32.xlu1 %v783_v44, 264  ;;  %785 = vbcast.lane.b32.xlu0 %v783_v44, 256  ;;  %v827_v44 = vrot.slane %v367_v35, %v2816_v2 }
 0x1fd   : > { %800 = vbcast.lane.b32.xlu1 %v794_v31, 264  ;;  %796 = vbcast.lane.b32.xlu0 %v794_v31, 256  ;;  %v849_v31 = vrot.slane %v367_v35, %v2832_v8 }
 0x201   : > { %811 = vbcast.lane.b32.xlu1 %v805_v38, 264  ;;  %807 = vbcast.lane.b32.xlu0 %v805_v38, 256  ;;  %v882_v38 = vrot.slane %v367_v35, %v2849_v14 }
 0x205   : > { %822 = vbcast.lane.b32.xlu1 %v816_v43, 264  ;;  %818 = vbcast.lane.b32.xlu0 %v816_v43, 256  ;;  %v893_v43 = vrot.slane %v367_v35, %v2854_v16 }
 0x209   : > { %833 = vbcast.lane.b32.xlu1 %v827_v44, 264  ;;  %829 = vbcast.lane.b32.xlu0 %v827_v44, 256  ;;  %v1091_v44 = vrot.slane %v3122_v41, %v2816_v2  ;;  %v1256_v2 = vrot.slane %v358_v54, %v2859_v18 }
 0x20d   : > { %844 = vbcast.lane.b32.xlu1 %v838_v4, 264  ;;  %840 = vbcast.lane.b32.xlu0 %v838_v4, 256  ;;  %v904_v4 = vrot.slane %v367_v35, %v2859_v18  ;;  %v1135_v35 = vrot.slane %v3122_v41, %v2844_v12 }
 0x211   : > { %855 = vbcast.lane.b32.xlu1 %v849_v31, 264  ;;  %851 = vbcast.lane.b32.xlu0 %v849_v31, 256  ;;  %v1102_v31 = vrot.slane %v3122_v41, %v2819_v3 }
 0x215   : > { %866 = vbcast.lane.b32.xlu1 %v860_v37, 264  ;;  %862 = vbcast.lane.b32.xlu0 %v860_v37, 256  ;;  %v1113_v37 = vrot.slane %v3122_v41, %v2832_v8 }
 0x219   : > { %877 = vbcast.lane.b32.xlu1 %v871_v40, 264  ;;  %873 = vbcast.lane.b32.xlu0 %v871_v40, 256  ;;  %v1124_v40 = vrot.slane %v3122_v41, %v2839_v10 }
 0x21d   : > { %888 = vbcast.lane.b32.xlu1 %v882_v38, 264  ;;  %884 = vbcast.lane.b32.xlu0 %v882_v38, 256  ;;  %v1146_v38 = vrot.slane %v3122_v41, %v2849_v14 }
 0x221   : > { %899 = vbcast.lane.b32.xlu1 %v893_v43, 264  ;;  %895 = vbcast.lane.b32.xlu0 %v893_v43, 256  ;;  %v1157_v43 = vrot.slane %v3122_v41, %v2854_v16 }
 0x225   : > { %910 = vbcast.lane.b32.xlu1 %v904_v4, 264  ;;  %906 = vbcast.lane.b32.xlu0 %v904_v4, 256  ;;  %v1168_v4 = vrot.slane %v3122_v41, %v2859_v18  ;;  %v1223_v41 = vrot.slane %v358_v54, %v2844_v12 }
 0x229   : > { %1093 = vbcast.lane.b32.xlu1 %v1091_v44, 256  ;;  %1104 = vbcast.lane.b32.xlu0 %v1102_v31, 256 }
 0x22d   : > { %1115 = vbcast.lane.b32.xlu1 %v1113_v37, 256  ;;  %1126 = vbcast.lane.b32.xlu0 %v1124_v40, 256 }
 0x231   : > { %1137 = vbcast.lane.b32.xlu1 %v1135_v35, 256  ;;  %1148 = vbcast.lane.b32.xlu0 %v1146_v38, 256 }
 0x235   : > { %1159 = vbcast.lane.b32.xlu1 %v1157_v43, 256  ;;  %1170 = vbcast.lane.b32.xlu0 %v1168_v4, 256 }
 0x239   : > { %1181 = vbcast.lane.b32.xlu1 %v1179_v30, 256  ;;  %1192 = vbcast.lane.b32.xlu0 %v1190_v0, 256 }
 0x23d   : > { %1203 = vbcast.lane.b32.xlu1 %v1201_v28, 256  ;;  %1214 = vbcast.lane.b32.xlu0 %v1212_v56, 256 }
 0x241   : > { %1225 = vbcast.lane.b32.xlu1 %v1223_v41, 256  ;;  %1236 = vbcast.lane.b32.xlu0 %v1234_v27, 256 }
 0x245   : > { %1247 = vbcast.lane.b32.xlu1 %v1245_v6, 256  ;;  %1258 = vbcast.lane.b32.xlu0 %v1256_v2, 256 }
 0x249   : > { %1108 = vbcast.lane.b32.xlu1 %v1102_v31, 264  ;;  %1097 = vbcast.lane.b32.xlu0 %v1091_v44, 264 }
 0x24d   : > { %1130 = vbcast.lane.b32.xlu1 %v1124_v40, 264  ;;  %1119 = vbcast.lane.b32.xlu0 %v1113_v37, 264 }
 0x251   : > { %1152 = vbcast.lane.b32.xlu1 %v1146_v38, 264  ;;  %1141 = vbcast.lane.b32.xlu0 %v1135_v35, 264 }
 0x255   : > { %1174 = vbcast.lane.b32.xlu1 %v1168_v4, 264  ;;  %1163 = vbcast.lane.b32.xlu0 %v1157_v43, 264 }
 0x259   : > { %1196 = vbcast.lane.b32.xlu1 %v1190_v0, 264  ;;  %1185 = vbcast.lane.b32.xlu0 %v1179_v30, 264 }
 0x25b   : > { %v3182_v3 = vpop.permute.xlu1 %745  ;;  %v3184_v8 = vpop.permute.xlu0 %741 }
 0x25d   : > { %1218 = vbcast.lane.b32.xlu1 %v1212_v56, 264  ;;  %1207 = vbcast.lane.b32.xlu0 %v1201_v28, 264 }
 0x25f   : > { %v3186_v10 = vpop.permute.xlu1 %756  ;;  %v3188_v12 = vpop.permute.xlu0 %752 }
 0x261   : > { %1240 = vbcast.lane.b32.xlu1 %v1234_v27, 264  ;;  %1229 = vbcast.lane.b32.xlu0 %v1223_v41, 264 }
 0x263   : > { %v3190_v14 = vpop.permute.xlu1 %767  ;;  %v3192_v16 = vpop.permute.xlu0 %763 }
 0x265   : > { %1262 = vbcast.lane.b32.xlu1 %v1256_v2, 264  ;;  %1251 = vbcast.lane.b32.xlu0 %v1245_v6, 264 }
 0x267   : > { %v3194_v0 = vpop.permute.xlu1 %778  ;;  %v3196_v18 = vpop.permute.xlu0 %774 }
 0x26b   : > { %v3198_v30 = vpop.permute.xlu1 %789  ;;  %v3200_v46 = vpop.permute.xlu0 %785 }
 0x26f   : > { %v3202_v28 = vpop.permute.xlu1 %800  ;;  %v3204_v56 = vpop.permute.xlu0 %796 }
 0x270   : > { %4000 = vst [vmem:[#allocation74_spill] sm:$0xff] %v3202_v28 }
 0x273   : > { %v3206_v27 = vpop.permute.xlu1 %811  ;;  %v3208_v54 = vpop.permute.xlu0 %807 }
 0x274   : > { %4001 = vst [vmem:[#allocation75_spill] sm:$0xff] %v3206_v27  ;;  %v2570_v27 = vmov 1934713408  }
 0x275   : > { %v1463_v28 = vunpack.c.l.s4 %v2570_v27  ;;  %v1266_v27 = vsel %vm1264_vm5, %v2898_v47, %v2985_v48  ;;  %v3270_v47 = vsel %vm1264_vm5, %v2917_v58, %v3001_v15  ;;  %v1273_v58 = vsel %vm1264_vm5, %v2931_v11, %v3011_v32  ;;  %v4017_v15 = vld [vmem:[#allocation17_spill] sm:$0xff] }
 0x276   : > { %v1277_v11 = vsel %vm1264_vm5, %v2941_v21, %v3019_v42  ;;  %v4014_v21 = vld [vmem:[#allocation29_spill] sm:$0xff]  ;;  %v4024_v42 = vld [vmem:[#allocation34_spill] sm:$0xff] }
 0x277   : > { %v3210_v34 = vpop.permute.xlu1 %822  ;;  %v3212_v44 = vpop.permute.xlu0 %818 }
 0x278   : > { %4002 = vst [vmem:[#allocation76_spill] sm:$0xff] %v3210_v34  ;;  %v2569_v34 = vmov 1983009808  }
 0x27b   : > { %v3214_v31 = vpop.permute.xlu1 %833  ;;  %v3216_v37 = vpop.permute.xlu0 %829 }
 0x27c   : > { %4003 = vst [vmem:[#allocation77_spill] sm:$0xff] %v3214_v31  ;;  %4004 = vst [vmem:[#allocation78_spill] sm:$0xff] %v3216_v37  ;;  %v1399_v31 = vunpack.c.l.s4 %v2569_v34  ;;  %v3254_v34 = vsel %vm1264_vm5, %v2902_v50, %v2991_v55  ;;  %v1269_v50 = vsel %vm1264_vm5, %v2921_v61, %v3003_v20  ;;  %v3314_v55 = vsel %vm1264_vm5, %v2943_v22, %v3021_v45  ;;  %v4018_v20 = vld [vmem:[#allocation31_spill] sm:$0xff]  ;;  %v4025_v45 = vld [vmem:[#allocation21_spill] sm:$0xff] }
 0x27f   : > { %v3218_v40 = vpop.permute.xlu1 %844  ;;  %v3220_v35 = vpop.permute.xlu0 %840 }
 0x280   : > { %4005 = vst [vmem:[#allocation79_spill] sm:$0xff] %v3218_v40  ;;  %4006 = vst [vmem:[#allocation80_spill] sm:$0xff] %v3220_v35  ;;  %v1400_v35 = vunpack.c.0.s8 %v1399_v31  ;;  %v3262_v31 = vsel %vm1264_vm5, %v2909_v53, %v2997_v63  ;;  %v1271_v53 = vsel %vm1264_vm5, %v2926_v5, %v3007_v26  ;;  %v1275_v5 = vsel %vm1264_vm5, %v2936_v17, %v3015_v36  ;;  %v4015_v63 = vld [vmem:[#allocation16_spill] sm:$0xff] }
 0x281   : > { %v3322_v17 = vsel %vm1264_vm5, %v2948_v25, %v3025_v52  ;;  %v3332_v22 = vsel %vm1264_vm5, %v4015_v63, %v4014_v21  ;;  %v4020_v26 = vld [vmem:[#allocation32_spill] sm:$0xff]  ;;  %v1304_v21 = vsel %vm1297_vm6, %v1271_v53, %v3196_v18  ;;  %v4026_v63 = vld [vmem:[#allocation35_spill] sm:$0xff] }
 0x282   : > { %v4023_v36 = vld [vmem:[#allocation20_spill] sm:$0xff] }
 0x283   : > { %v3222_v38 = vpop.permute.xlu1 %855  ;;  %v3224_v43 = vpop.permute.xlu0 %851  ;;  %v4035_v53 = vld [vmem:[#allocation24_spill] sm:$0xff] }
 0x284   : > { %4007 = vst [vmem:[#allocation81_spill] sm:$0xff] %v3222_v38  ;;  %4008 = vst [vmem:[#allocation82_spill] sm:$0xff] %v3224_v43  ;;  %v1464_v38 = vunpack.c.0.s8 %v1463_v28  ;;  %v1265_v28 = vsel %vm1264_vm5, %v2904_v51, %v2995_v60  ;;  %v3278_v51 = vsel %vm1264_vm5, %v2923_v62, %v3005_v23  ;;  %v3298_v62 = vsel %vm1264_vm5, %v2933_v13, %v3013_v33  ;;  %v4019_v23 = vld [vmem:[#allocation18_spill] sm:$0xff]  ;;  %v4022_v33 = vld [vmem:[#allocation33_spill] sm:$0xff] }
 0x285   : > { %v1279_v13 = vsel %vm1264_vm5, %v2946_v24, %v3023_v49  ;;  %v3342_v25 = vsel %vm1264_vm5, %v4019_v23, %v4018_v20  ;;  %v3357_v49 = vsel %vm1264_vm5, %v4025_v45, %v4024_v42  ;;  %v4028_v20 = vld [vmem:[#allocation36_spill] sm:$0xff]  ;;  %v4029_v23 = vld [vmem:[#allocation23_spill] sm:$0xff]  ;;  %v1299_v45 = vsel %vm1297_vm6, %v1266_v27, %v3182_v3 }
 0x287   : > { %v3226_v4 = vpop.permute.xlu1 %866  ;;  %v3228_v41 = vpop.permute.xlu0 %862 }
 0x288   : > { %4009 = vst [vmem:[#allocation83_spill] sm:$0xff] %v3226_v4  ;;  %4010 = vst [vmem:[#allocation84_spill] sm:$0xff] %v3228_v41  ;;  %v3243_v41 = vsub.s32 %v1400_v35, %v2813_v1  ;;  %v1298_v35 = vsel %vm1297_vm6, %v1265_v28, %v3184_v8  ;;  %v4030_v8 = vld [vmem:[#allocation37_spill] sm:$0xff] }
 0x289   : > { %v4031_v28 = vld [vmem:[#allocation25_spill] sm:$0xff] }
 0x28b   : > { %v3230_v6 = vpop.permute.xlu1 %877  ;;  %v3232_v2 = vpop.permute.xlu0 %873 }
 0x28c   : > { %4011 = vst [vmem:[#allocation85_spill] sm:$0xff] %v3230_v6  ;;  %v3246_v6 = vsub.s32 %v1464_v38, %v2813_v1  ;;  %v1267_v1 = vsel %vm1264_vm5, %v2914_v57, %v2999_v9  ;;  %v3286_v57 = vsel %vm1264_vm5, %v2928_v7, %v3009_v29  ;;  %v3306_v7 = vsel %vm1264_vm5, %v2938_v19, %v3017_v39  ;;  %v4013_v19 = vld [vmem:[#allocation15_spill] sm:$0xff]  ;;  %v4016_v9 = vld [vmem:[#allocation30_spill] sm:$0xff] }
 0x28d   : > { %v3327_v60 = vsel %vm1264_vm5, %v4013_v19, %v3027_v59  ;;  %v3337_v24 = vsel %vm1264_vm5, %v4017_v15, %v4016_v9  ;;  %v4021_v29 = vld [vmem:[#allocation19_spill] sm:$0xff]  ;;  %v3352_v39 = vsel %vm1264_vm5, %v4023_v36, %v4022_v33  ;;  %v1300_v38 = vsel %vm1297_vm6, %v1267_v1, %v3188_v12  ;;  %v4027_v9 = vld [vmem:[#allocation22_spill] sm:$0xff]  ;;  %v4037_v36 = vld [vmem:[#allocation28_spill] sm:$0xff] }
 0x28e   : > { %v3347_v32 = vsel %vm1264_vm5, %v4021_v29, %v4020_v26  ;;  %v1302_v19 = vsel %vm1297_vm6, %v1269_v50, %v3192_v16  ;;  %v3370_v15 = vsel %vm1264_vm5, %v4027_v9, %v4026_v63  ;;  %v3375_v26 = vsel %vm1264_vm5, %v4029_v23, %v4028_v20  ;;  %v4032_v16 = vld [vmem:[#allocation38_spill] sm:$0xff]  ;;  %v4033_v1 = vld [vmem:[#allocation27_spill] sm:$0xff]  ;;  %v4038_v63 = vld [vmem:[#allocation40_spill] sm:$0xff] }
 0x28f   : > { %v3234_v37 = vpop.permute.xlu1 %888  ;;  %v3236_v40 = vpop.permute.xlu0 %884  ;;  %v3380_v12 = vsel %vm1264_vm5, %v4031_v28, %v4030_v8  ;;  %v3385_v18 = vsel %vm1264_vm5, %v4033_v1, %v4032_v16  ;;  %v4034_v50 = vld [vmem:[#allocation43_spill] sm:$0xff]  ;;  %v1331_v9 = vsel %vm1330_vm7, %v1298_v35, %v4038_v63  ;;  %v4039_v20 = vld [vmem:[#allocation41_spill] sm:$0xff]  ;;  %v4040_v28 = vld [vmem:[#allocation42_spill] sm:$0xff] }
 0x290   : > { %v3390_v29 = vsel %vm1264_vm5, %v4035_v53, %v4034_v50  ;;  %v4036_v33 = vld [vmem:[#allocation39_spill] sm:$0xff]  ;;  %v1333_v23 = vsel %vm1330_vm7, %v1300_v38, %v4039_v20  ;;  %v1335_v16 = vsel %vm1330_vm7, %v1302_v19, %v4040_v28  ;;  %v4041_v1 = vld [vmem:[#allocation44_spill] sm:$0xff]  ;;  %v1306_v20 = vsel %vm1297_vm6, %v1273_v58, %v3200_v46  ;;  %v4042_v46 = vld [vmem:[#allocation45_spill] sm:$0xff] }
 0x291   : > { %v3395_v42 = vsel %vm1264_vm5, %v4037_v36, %v4036_v33  ;;  %v1337_v50 = vsel %vm1330_vm7, %v1304_v21, %v4041_v1  ;;  %v1308_v19 = vsel %vm1297_vm6, %v1275_v5, %v3204_v56  ;;  %v1310_v21 = vsel %vm1297_vm6, %v1277_v11, %v3208_v54  ;;  %v4043_v58 = vld [vmem:[#allocation26_spill] sm:$0xff]  ;;  %v4044_v5 = vld [vmem:[#allocation47_spill] sm:$0xff] }
 0x292   : > { %v3426_v56 = vsel %vm1264_vm5, %v4043_v58, %v4042_v46  ;;  %v1301_v54 = vsel %vm1297_vm6, %v3254_v34, %v3186_v10  ;;  %v4048_v34 = vld [vmem:[#allocation52_spill] sm:$0xff]  ;;  %v1305_v58 = vsel %vm1297_vm6, %v3270_v47, %v3194_v0  ;;  %vm2096_vm5 = vcmask 531456  }
 0x293   : > { %v3238_v43 = vpop.permute.xlu1 %899  ;;  %v3240_v4 = vpop.permute.xlu0 %895 }
 0x297   : > { %v3291_v48 = vpop.permute.xlu1 %910  ;;  %v3293_v61 = vpop.permute.xlu0 %906 }
 0x298   : > { %4012 = vst [vmem:[#allocation86_spill] sm:$0xff] %v3291_v48 }
 0x29b   : > { %v1094_v52 = vpop.permute.xlu1 %1093  ;;  %v1105_v59 = vpop.permute.xlu0 %1104 }
 0x29c   : > { %v1364_v33 = vsel %vm1363_vm8, %v1331_v9, %v1094_v52  ;;  %v1366_v36 = vsel %vm1363_vm8, %v1333_v23, %v1105_v59  ;;  %v1312_v52 = vsel %vm1297_vm6, %v1279_v13, %v3212_v44  ;;  %v1303_v44 = vsel %vm1297_vm6, %v3262_v31, %v3190_v14 }
 0x29d   : > { %v1345_v14 = vsel %vm1330_vm7, %v1312_v52, %v4048_v34 }
 0x29f   : > { %v1116_v8 = vpop.permute.xlu1 %1115  ;;  %v1127_v53 = vpop.permute.xlu0 %1126 }
 0x2a0   : > { %v1368_v3 = vsel %vm1363_vm8, %v1335_v16, %v1116_v8  ;;  %v1370_v27 = vsel %vm1363_vm8, %v1337_v50, %v1127_v53  ;;  %v4045_v53 = vld [vmem:[#allocation46_spill] sm:$0xff] }
 0x2a1   : > { %v1396_v35 = vcombine.low %v1364_v33, %v1368_v3  ;;  %v1397_v63 = vcombine.high %v1364_v33, %v1368_v3  ;;  %v1412_v48 = vcombine.low %v1366_v36, %v1370_v27  ;;  %v1413_v38 = vcombine.high %v1366_v36, %v1370_v27  ;;  %v4046_v36 = vld [vmem:[#allocation48_spill] sm:$0xff]  ;;  %v4047_v27 = vld [vmem:[#allocation50_spill] sm:$0xff] }
 0x2a2   : > { %v1339_v33 = vsel %vm1330_vm7, %v1306_v20, %v4045_v53  ;;  %v1341_v3 = vsel %vm1330_vm7, %v1308_v19, %v4046_v36  ;;  %v1343_v10 = vsel %vm1330_vm7, %v1310_v21, %v4047_v27  ;;  %v4051_v36 = vld [vmem:[#allocation80_spill] sm:$0xff]  ;;  %v4054_v27 = vld [vmem:[#allocation51_spill] sm:$0xff] }
 0x2a3   : > { %v1404_v59 = vrot.slane %v1396_v35, %v3243_v41  ;;  %v1411_v9 = vrot.slane %v1397_v63, %v3243_v41  ;;  %v1420_v23 = vrot.slane %v1412_v48, %v3243_v41  ;;  %v1427_v8 = vrot.slane %v1413_v38, %v3243_v41  ;;  %v1138_v28 = vpop.permute.xlu1 %1137  ;;  %v1149_v16 = vpop.permute.xlu0 %1148 }
 0x2a4   : > { %v3436_v48 = vsel %vm1330_vm7, %v1299_v45, %v4044_v5  ;;  %v1372_v19 = vsel %vm1363_vm8, %v1339_v33, %v1138_v28  ;;  %v1374_v21 = vsel %vm1363_vm8, %v1341_v3, %v1149_v16  ;;  %v1307_v5 = vsel %vm1297_vm6, %v3278_v51, %v3198_v30  ;;  %v4050_v16 = vld [vmem:[#allocation82_spill] sm:$0xff]  ;;  %v4052_v51 = vld [vmem:[#allocation84_spill] sm:$0xff]  ;;  %v4053_v3 = vld [vmem:[#allocation49_spill] sm:$0xff] }
 0x2a5   : > { %v1460_v11 = vcombine.low %v1404_v59, %v1420_v23  ;;  %v1461_v13 = vcombine.high %v1404_v59, %v1420_v23  ;;  %v1476_v1 = vcombine.low %v1411_v9, %v1427_v8  ;;  %v1477_v50 = vcombine.high %v1411_v9, %v1427_v8 }
 0x2a6   : > { %v1316_v30 = vsel %vm1297_vm6, %v3337_v24, %v4051_v36  ;;  %v4056_v24 = vld [vmem:[#allocation58_spill] sm:$0xff]  ;;  %v4062_v36 = vld [vmem:[#allocation75_spill] sm:$0xff] }
 0x2a7   : > { %v3447_v31 = vrot.slane %v1460_v11, %v3246_v6  ;;  %v3450_v45 = vrot.slane %v1461_v13, %v3246_v6  ;;  %v3453_v35 = vrot.slane %v1476_v1, %v3246_v6  ;;  %v3456_v63 = vrot.slane %v1477_v50, %v3246_v6  ;;  %v1160_v38 = vpop.permute.xlu1 %1159  ;;  %v1171_v20 = vpop.permute.xlu0 %1170  ;;  %v4049_v11 = vld [vmem:[#allocation78_spill] sm:$0xff] }
 0x2a8   : > { %v1376_v52 = vsel %vm1363_vm8, %v1343_v10, %v1160_v38  ;;  %v1378_v59 = vsel %vm1363_vm8, %v1345_v14, %v1171_v20  ;;  %v1314_v28 = vsel %vm1297_vm6, %v3327_v60, %v4049_v11  ;;  %v1318_v13 = vsel %vm1297_vm6, %v3347_v32, %v4050_v16  ;;  %v4059_v11 = vld [vmem:[#allocation60_spill] sm:$0xff] }
 0x2a9   : > { %v1428_v9 = vcombine.low %v1372_v19, %v1376_v52  ;;  %v1429_v23 = vcombine.high %v1372_v19, %v1376_v52  ;;  %v1444_v8 = vcombine.low %v1374_v21, %v1378_v59  ;;  %v1445_v46 = vcombine.high %v1374_v21, %v1378_v59  ;;  %v4055_v19 = vld [vmem:[#allocation54_spill] sm:$0xff]  ;;  %v4057_v59 = vld [vmem:[#allocation53_spill] sm:$0xff] }
 0x2aa   : > { %v1320_v60 = vsel %vm1297_vm6, %v3357_v49, %v4052_v51  ;;  %v3486_v32 = vsel %vm1330_vm7, %v1301_v54, %v4053_v3  ;;  %v3490_v10 = vsel %vm1330_vm7, %v1303_v44, %v4054_v27  ;;  %v1347_v21 = vsel %vm1330_vm7, %v1314_v28, %v4055_v19  ;;  %v4058_v54 = vld [vmem:[#allocation55_spill] sm:$0xff] }
 0x2ab   : > { %v1436_v1 = vrot.slane %v1428_v9, %v3243_v41  ;;  %v1443_v50 = vrot.slane %v1429_v23, %v3243_v41  ;;  %v1452_v53 = vrot.slane %v1444_v8, %v3243_v41  ;;  %v1459_v0 = vrot.slane %v1445_v46, %v3243_v41  ;;  %v1182_v47 = vpop.permute.xlu1 %1181  ;;  %v1193_v33 = vpop.permute.xlu0 %1192 }
 0x2ac   : > { %v1351_v52 = vsel %vm1330_vm7, %v1318_v13, %v4056_v24  ;;  %v3498_v49 = vsel %vm1330_vm7, %v1305_v58, %v4057_v59  ;;  %v3502_v9 = vsel %vm1330_vm7, %v1307_v5, %v4058_v54  ;;  %v1353_v28 = vsel %vm1330_vm7, %v1320_v60, %v4059_v11  ;;  %v4060_v13 = vld [vmem:[#allocation56_spill] sm:$0xff]  ;;  %v4068_v54 = vld [vmem:[#allocation62_spill] sm:$0xff] }
 0x2ad   : > { %v1492_v34 = vcombine.low %v1436_v1, %v1452_v53  ;;  %v1493_v14 = vcombine.high %v1436_v1, %v1452_v53  ;;  %v1508_v38 = vcombine.low %v1443_v50, %v1459_v0  ;;  %v1509_v20 = vcombine.high %v1443_v50, %v1459_v0  ;;  %v4061_v53 = vld [vmem:[#allocation74_spill] sm:$0xff] }
 0x2ae   : > { %v1349_v5 = vsel %vm1330_vm7, %v1316_v30, %v4060_v13  ;;  %v1309_v0 = vsel %vm1297_vm6, %v3286_v57, %v4061_v53  ;;  %v1311_v51 = vsel %vm1297_vm6, %v3298_v62, %v4062_v36  ;;  %v3533_v60 = vsel %vm1363_vm8, %v1347_v21, %v1182_v47  ;;  %v4064_v21 = vld [vmem:[#allocation77_spill] sm:$0xff] }
 0x2af   : > { %v3505_v44 = vrot.slane %v1492_v34, %v3246_v6  ;;  %v3508_v23 = vrot.slane %v1493_v14, %v3246_v6  ;;  %v3511_v8 = vrot.slane %v1508_v38, %v3246_v6  ;;  %v1204_v46 = vpop.permute.xlu1 %1203  ;;  %v1215_v16 = vpop.permute.xlu0 %1214  ;;  %v3516_v58 = vrot.slane %v1509_v20, %v3246_v6 }
 0x2b0   : > { %v3521_v1 = vsel %vm1363_vm8, %v1351_v52, %v1204_v46  ;;  %v3524_v50 = vsel %vm1363_vm8, %v1353_v28, %v1215_v16  ;;  %v3536_v3 = vsel %vm1363_vm8, %v1349_v5, %v1193_v33  ;;  %v1322_v62 = vsel %vm1297_vm6, %v3375_v26, %v3232_v2  ;;  %v4067_v52 = vld [vmem:[#allocation69_spill] sm:$0xff]  ;;  %v4069_v16 = vld [vmem:[#allocation70_spill] sm:$0xff]  ;;  %v4070_v5 = vld [vmem:[#allocation64_spill] sm:$0xff] }
 0x2b1   : > { %v1525_v30 = vcombine.high %v3447_v31, %v3505_v44  ;;  %v1526_v27 = vcombine.low %v3450_v45, %v3508_v23  ;;  %v1527_v34 = vcombine.high %v3450_v45, %v3508_v23  ;;  %v1528_v57 = vcombine.low %v3453_v35, %v3511_v8 }
 0x2b2   : > { %v1324_v47 = vsel %vm1297_vm6, %v3380_v12, %v3236_v40  ;;  %v1532_v33 = vcombine.low %v3533_v60, %v3521_v1  ;;  %v1548_v14 = vcombine.low %v3536_v3, %v3524_v50  ;;  %v1326_v45 = vsel %vm1297_vm6, %v3385_v18, %v3240_v4  ;;  %v4063_v12 = vld [vmem:[#allocation76_spill] sm:$0xff]  ;;  %v4065_v18 = vld [vmem:[#allocation57_spill] sm:$0xff] }
 0x2b3   : > { %v1226_v38 = vpop.permute.xlu1 %1225  ;;  %v1237_v20 = vpop.permute.xlu0 %1236  ;;  %v1328_v2 = vsel %vm1297_vm6, %v3395_v42, %v3293_v61  ;;  %1942 = vrot.lane.b32.xlu0 %v1525_v30, %s2571_s26  ;;  %v1529_v40 = vcombine.high %v3453_v35, %v3511_v8  ;;  %v1530_v26 = vcombine.low %v3456_v63, %v3516_v58  ;;  %v1313_v19 = vsel %vm1297_vm6, %v3306_v7, %v4063_v12  ;;  %v4066_v42 = vld [vmem:[#allocation59_spill] sm:$0xff] }
 0x2b4   : > { %v1315_v4 = vsel %vm1297_vm6, %v3314_v55, %v4064_v21  ;;  %v3575_v61 = vsel %vm1330_vm7, %v1309_v0, %v4065_v18  ;;  %v3579_v24 = vsel %vm1330_vm7, %v1311_v51, %v4066_v42  ;;  %v1355_v59 = vsel %vm1330_vm7, %v1322_v62, %v4067_v52  ;;  %v4074_v21 = vld [vmem:[#allocation85_spill] sm:$0xff] }
 0x2b5   : > { %v1357_v23 = vsel %vm1330_vm7, %v1324_v47, %v4068_v54  ;;  %v1531_v7 = vcombine.high %v3456_v63, %v3516_v58  ;;  %v1524_v55 = vcombine.low %v3447_v31, %v3505_v44  ;;  %v3590_v46 = vrot.slane %v1532_v33, %v3243_v41  ;;  %v4071_v47 = vld [vmem:[#allocation79_spill] sm:$0xff] }
 0x2b6   : > { %v3593_v11 = vrot.slane %v1548_v14, %v3243_v41  ;;  %v1359_v13 = vsel %vm1330_vm7, %v1326_v45, %v4069_v16  ;;  %v1361_v53 = vsel %vm1330_vm7, %v1328_v2, %v4070_v5  ;;  %v1388_v36 = vsel %vm1363_vm8, %v1355_v59, %v1226_v38  ;;  %v4072_v14 = vld [vmem:[#allocation81_spill] sm:$0xff]  ;;  %v4073_v38 = vld [vmem:[#allocation83_spill] sm:$0xff]  ;;  %v4081_v5 = vld [vmem:[#allocation66_spill] sm:$0xff] }
 0x2b7   : > { %v1248_v28 = vpop.permute.xlu1 %1247  ;;  %v1259_v0 = vpop.permute.xlu0 %1258  ;;  %v1390_v51 = vsel %vm1363_vm8, %v1357_v23, %v1237_v20  ;;  %1950 = vrot.lane.b32.xlu0 %v1526_v27, %s2572_s19  ;;  %v1317_v33 = vsel %vm1297_vm6, %v3322_v17, %v4071_v47  ;;  %v1319_v45 = vsel %vm1297_vm6, %v3332_v22, %v4072_v14  ;;  %v1321_v20 = vsel %vm1297_vm6, %v3342_v25, %v4073_v38  ;;  %v4079_v16 = vld [vmem:[#allocation71_spill] sm:$0xff] }
 0x2b8   : > { %v1392_v30 = vsel %vm1363_vm8, %v1359_v13, %v1248_v28  ;;  %v1394_v62 = vsel %vm1363_vm8, %v1361_v53, %v1259_v0  ;;  %v1323_v27 = vsel %vm1297_vm6, %v3352_v39, %v4074_v21  ;;  %v1325_v18 = vsel %vm1297_vm6, %v3370_v15, %v3234_v37  ;;  %v4075_v39 = vld [vmem:[#allocation61_spill] sm:$0xff] }
 0x2b9   : > { %v1564_v2 = vcombine.low %v1388_v36, %v1392_v30  ;;  %v1580_v12 = vcombine.low %v1390_v51, %v1394_v62  ;;  %v1533_v17 = vcombine.high %v3533_v60, %v3521_v1  ;;  %v1549_v22 = vcombine.high %v3536_v3, %v3524_v50  ;;  %v4076_v15 = vld [vmem:[#allocation65_spill] sm:$0xff]  ;;  %v4077_v50 = vld [vmem:[#allocation63_spill] sm:$0xff] }
 0x2ba   : > { %v1596_v42 = vcombine.low %v3590_v46, %v3593_v11  ;;  %v1346_v37 = vsel %vm1330_vm7, %v1313_v19, %v4075_v39  ;;  %v3632_v1 = vsel %vm1330_vm7, %v1317_v33, %v4076_v15  ;;  %v3636_v60 = vsel %vm1330_vm7, %v1315_v4, %v4077_v50  ;;  %v4078_v3 = vld [vmem:[#allocation67_spill] sm:$0xff] }
 0x2bb   : > { %v1572_v52 = vrot.slane %v1564_v2, %v3243_v41  ;;  %v1588_v25 = vrot.slane %v1580_v12, %v3243_v41  ;;  %v1109_v59 = vpop.permute.xlu1 %1108  ;;  %v1098_v54 = vpop.permute.xlu0 %1097  ;;  %1958 = vrot.lane.b32.xlu0 %v1527_v34, %s2573_s30  ;;  %v3640_v23 = vsel %vm1330_vm7, %v1319_v45, %v4078_v3  ;;  %v3644_v13 = vsel %vm1330_vm7, %v1321_v20, %v4079_v16  ;;  %v4080_v34 = vld [vmem:[#allocation72_spill] sm:$0xff] }
 0x2bc   : > { %v3648_v19 = vsel %vm1330_vm7, %v1325_v18, %v4080_v34  ;;  %v3652_v53 = vsel %vm1330_vm7, %v1323_v27, %v4081_v5  ;;  %v3655_v4 = vrot.slane %v1533_v17, %v3243_v41  ;;  %v1565_v0 = vcombine.high %v1388_v36, %v1392_v30 }
 0x2bd   : > { %v1628_v28 = vcombine.low %v1572_v52, %v1588_v25  ;;  %v1581_v47 = vcombine.high %v1390_v51, %v1394_v62  ;;  %v1629_v33 = vcombine.high %v1572_v52, %v1588_v25  ;;  %v3658_v14 = vrot.slane %v1549_v22, %v3243_v41 }
 0x2be   : > { %v1597_v45 = vcombine.high %v3590_v46, %v3593_v11  ;;  %v3663_v2 = vrot.slane %v1596_v42, %v3246_v6  ;;  %v1367_v21 = vsel %vm1363_vm8, %v3486_v32, %v1109_v59  ;;  %v1365_v36 = vsel %vm1363_vm8, %v3436_v48, %v1098_v54 }
 0x2bf   : > { %v3666_v12 = vrot.slane %v1628_v28, %v3246_v6  ;;  %v1131_v38 = vpop.permute.xlu1 %1130  ;;  %v1120_v20 = vpop.permute.xlu0 %1119  ;;  %1966 = vrot.lane.b32.xlu0 %v1528_v57, %s2574_s9  ;;  %v1579_v32 = vrot.slane %v1565_v0, %v3243_v41  ;;  %v1595_v48 = vrot.slane %v1581_v47, %v3243_v41  ;;  %v1643_v18 = vrot.slane %v1629_v33, %v3246_v6 }
 0x2c0   : > { %v1371_v51 = vsel %vm1363_vm8, %v3498_v49, %v1131_v38  ;;  %v1369_v46 = vsel %vm1363_vm8, %v3490_v10, %v1120_v20  ;;  %v1327_v25 = vsel %vm1297_vm6, %v3390_v29, %v3238_v43  ;;  %v1611_v59 = vrot.slane %v1597_v45, %v3246_v6 }
 0x2c1   : > { %v1684_v11 = vcombine.low %v1367_v21, %v1371_v51  ;;  %v1685_v30 = vcombine.high %v1367_v21, %v1371_v51  ;;  %v1668_v62 = vcombine.low %v1365_v36, %v1369_v46  ;;  %v1669_v27 = vcombine.high %v1365_v36, %v1369_v46 }
 0x2c2   : > { %v1661_v49 = vcombine.high %v3663_v2, %v3666_v12  ;;  %v1612_v54 = vcombine.low %v3655_v4, %v3658_v14  ;;  %v1644_v28 = vcombine.low %v1579_v32, %v1595_v48  ;;  %v1662_v29 = vcombine.low %v1611_v59, %v1643_v18 }
 0x2c3   : > { %v1692_v17 = vrot.slane %v1684_v11, %v3243_v41  ;;  %v1699_v57 = vrot.slane %v1685_v30, %v3243_v41  ;;  %v1676_v22 = vrot.slane %v1668_v62, %v3243_v41  ;;  %v1683_v10 = vrot.slane %v1669_v27, %v3243_v41  ;;  %v1153_v42 = vpop.permute.xlu1 %1152  ;;  %v1142_v52 = vpop.permute.xlu0 %1141  ;;  %1974 = vrot.lane.b32.xlu0 %v1529_v40, %s2575_s23  ;;  %v4082_v27 = vld [vmem:[#allocation86_spill] sm:$0xff] }
 0x2c4   : > { %1944 = vrot.lane.b32.xlu1 %v1661_v49, %s2571_s26  ;;  %v1375_v43 = vsel %vm1363_vm8, %v3575_v61, %v1153_v42  ;;  %v1660_v16 = vcombine.low %v3663_v2, %v3666_v12  ;;  %v1373_v61 = vsel %vm1363_vm8, %v3502_v9, %v1142_v52  ;;  %v1613_v9 = vcombine.high %v3655_v4, %v3658_v14  ;;  %v4083_v14 = vld [vmem:[#allocation68_spill] sm:$0xff]  ;;  %s3861_s26 = scalar_lea.hbm %s3916_s3, %s2285_s18 }
 0x2c5   : > { %v1732_v39 = vcombine.low %v1676_v22, %v1692_v17  ;;  %v1733_v15 = vcombine.high %v1676_v22, %v1692_v17  ;;  %v1748_v50 = vcombine.low %v1683_v10, %v1699_v57  ;;  %v1749_v3 = vcombine.high %v1683_v10, %v1699_v57 }
 0x2c6   : > { %v1645_v36 = vcombine.high %v1579_v32, %v1595_v48  ;;  %v1663_v51 = vcombine.high %v1611_v59, %v1643_v18  ;;  %v1329_v49 = vsel %vm1297_vm6, %v3426_v56, %v4082_v27  ;;  %v1620_v4 = vrot.slane %v1612_v54, %v3246_v6 }
 0x2c7   : > { %v3705_v34 = vrot.slane %v1732_v39, %v3246_v6  ;;  %v3708_v35 = vrot.slane %v1733_v15, %v3246_v6  ;;  %v3711_v8 = vrot.slane %v1748_v50, %v3246_v6  ;;  %v3714_v40 = vrot.slane %v1749_v3, %v3246_v6  ;;  %v1175_v5 = vpop.permute.xlu1 %1174  ;;  %v1164_v0 = vpop.permute.xlu0 %1163  ;;  %1982 = vrot.lane.b32.xlu0 %v1530_v26, %s2576_s29 }
 0x2c8   : > { %v1379_v47 = vsel %vm1363_vm8, %v1346_v37, %v1175_v5  ;;  %1952 = vrot.lane.b32.xlu1 %v1662_v29, %s2572_s19  ;;  %v1377_v33 = vsel %vm1363_vm8, %v3579_v24, %v1164_v0  ;;  %v1652_v37 = vrot.slane %v1644_v28, %v3246_v6  ;;  %v1360_v32 = vsel %vm1330_vm7, %v1327_v25, %v4083_v14  ;;  %s2473_s19 = scalar_lea.vmem %s3854_s11, 256 }
 0x2c9   : > { %v1716_v45 = vcombine.low %v1375_v43, %v1379_v47  ;;  %v1717_v38 = vcombine.high %v1375_v43, %v1379_v47  ;;  %v1700_v20 = vcombine.low %v1373_v61, %v1377_v33  ;;  %v1701_v21 = vcombine.high %v1373_v61, %v1377_v33  ;;  %p2474_p0 = scmp.ne.s32.totalorder %s3854_s11, %s2473_s19 }
 0x2ca   : > { %v3745_v22 = vrot.slane %v1613_v9, %v3246_v6  ;;  %v3748_v56 = vrot.slane %v1645_v36, %v3246_v6  ;;  %v1664_v10 = vcombine.low %v1620_v4, %v1652_v37  ;;  %v1665_v42 = vcombine.high %v1620_v4, %v1652_v37 }
 0x2cb   : > { %v1724_v46 = vrot.slane %v1716_v45, %v3243_v41  ;;  %v1731_v26 = vrot.slane %v1717_v38, %v3243_v41  ;;  %v1708_v11 = vrot.slane %v1700_v20, %v3243_v41  ;;  %v1715_v30 = vrot.slane %v1701_v21, %v3243_v41  ;;  %v1197_v24 = vpop.permute.xlu1 %1196  ;;  %v1186_v62 = vpop.permute.xlu0 %1185  ;;  %1990 = vrot.lane.b32.xlu0 %v1531_v7, %s2577_s8  ;;  %p2475_p12 = pnand %p2474_p0, %p4085_p6 }
 0x2cc   : > { %1960 = vrot.lane.b32.xlu1 %v1663_v51, %s2573_s30  ;;  %v1383_v54 = vsel %vm1363_vm8, %v3632_v1, %v1197_v24  ;;  %v1381_v39 = vsel %vm1363_vm8, %v3636_v60, %v1186_v62  ;;  %vm2099_vm6 = vcmask 572416   ;;  %s2586_s30 = smov [#allocation8]  }
 0x2cd   : > { %v1764_v48 = vcombine.low %v1708_v11, %v1724_v46  ;;  %v1765_v18 = vcombine.high %v1708_v11, %v1724_v46  ;;  %v1780_v17 = vcombine.low %v1715_v30, %v1731_v26  ;;  %v1781_v57 = vcombine.high %v1715_v30, %v1731_v26  ;;  %p2476_p8 = pneg %p2475_p12 }
 0x2cf   : > { %v1772_v63 = vrot.slane %v1764_v48, %v3246_v6  ;;  %v3752_v58 = vrot.slane %v1765_v18, %v3246_v6  ;;  %v3755_v7 = vrot.slane %v1780_v17, %v3246_v6  ;;  %v3758_v52 = vrot.slane %v1781_v57, %v3246_v6  ;;  %v1219_v25 = vpop.permute.xlu1 %1218  ;;  %v1208_v59 = vpop.permute.xlu0 %1207 }
 0x2d0   : > { %v1387_v15 = vsel %vm1363_vm8, %v3644_v13, %v1219_v25  ;;  %1968 = vrot.lane.b32.xlu1 %v1664_v10, %s2574_s9  ;;  %v1385_v50 = vsel %vm1363_vm8, %v3640_v23, %v1208_v59  ;;  %v1667_v57 = vcombine.high %v3745_v22, %v3748_v56  ;;  %s2477_s9 = sshll.u32 %s2586_s30, 4  ;;  %s2478_s9 = int_to_ptr.vmem [resolvable:$false] %s2477_s9 }
 0x2d1   : > { %v1820_v3 = vcombine.low %v1383_v54, %v1387_v15  ;;  %v1821_v28 = vcombine.high %v1383_v54, %v1387_v15  ;;  %v1804_v43 = vcombine.low %v1381_v39, %v1385_v50  ;;  %v1805_v29 = vcombine.high %v1381_v39, %v1385_v50  ;;  %p2480_p11 = scmp.lt.s32.totalorder %s3854_s11, %s2478_s9 }
 0x2d2   : > { %v1796_v5 = vcombine.low %v3705_v34, %v1772_v63  ;;  %v1797_v0 = vcombine.high %v3705_v34, %v1772_v63  ;;  %v1798_v1 = vcombine.low %v3708_v35, %v3752_v58  ;;  %v1799_v60 = vcombine.high %v3708_v35, %v3752_v58  ;;  %v4084_v34 = vld [vmem:[#allocation73_spill] sm:$0xff] }
 0x2d3   : > { %v1828_v13 = vrot.slane %v1820_v3, %v3243_v41  ;;  %v1835_v61 = vrot.slane %v1821_v28, %v3243_v41  ;;  %v1812_v23 = vrot.slane %v1804_v43, %v3243_v41  ;;  %v1819_v47 = vrot.slane %v1805_v29, %v3243_v41  ;;  %v1241_v33 = vpop.permute.xlu1 %1240  ;;  %v1230_v45 = vpop.permute.xlu0 %1229 }
 0x2d4   : > { %1976 = vrot.lane.b32.xlu1 %v1665_v42, %s2575_s23  ;;  %1998 = vrot.lane.b32.xlu0 %v1796_v5, %s2578_s10  ;;  %v1362_v38 = vsel %vm1330_vm7, %v1329_v49, %v4084_v34  ;;  %v1666_v35 = vcombine.low %v3745_v22, %v3748_v56  ;;  %v1800_v20 = vcombine.low %v3711_v8, %v3755_v7  ;;  %vm2102_vm7 = vcmask 613376   ;;  %s2479_s23 = scalar_lea.vmem %s2478_s9, 512 }
 0x2d5   : > { %v1868_v21 = vcombine.low %v1812_v23, %v1828_v13  ;;  %v1869_v9 = vcombine.high %v1812_v23, %v1828_v13  ;;  %v1884_v36 = vcombine.low %v1819_v47, %v1835_v61  ;;  %v1885_v37 = vcombine.high %v1819_v47, %v1835_v61  ;;  %p2481_p4 = scmp.lt.s32.totalorder %s2479_s23, %s2473_s19 }
 0x2d6   : > { %v1391_v51 = vsel %vm1363_vm8, %v3648_v19, %v1241_v33  ;;  %v1801_v46 = vcombine.high %v3711_v8, %v3755_v7  ;;  %v1802_v26 = vcombine.low %v3714_v40, %v3758_v52  ;;  %v1803_v11 = vcombine.high %v3714_v40, %v3758_v52 }
 0x2d7   : > { %v1876_v30 = vrot.slane %v1868_v21, %v3246_v6  ;;  %v1883_v24 = vrot.slane %v1869_v9, %v3246_v6  ;;  %v1892_v62 = vrot.slane %v1884_v36, %v3246_v6  ;;  %v1899_v27 = vrot.slane %v1885_v37, %v3246_v6  ;;  %v1263_v49 = vpop.permute.xlu1 %1262  ;;  %v1252_v4 = vpop.permute.xlu0 %1251  ;;  %p2482_p10 = por %p2481_p4, %p2480_p11 }
 0x2d8   : > { %v1389_v19 = vsel %vm1363_vm8, %v3652_v53, %v1230_v45  ;;  %v1395_v8 = vsel %vm1363_vm8, %v1362_v38, %v1263_v49  ;;  %1984 = vrot.lane.b32.xlu1 %v1666_v35, %s2576_s29  ;;  %2006 = vrot.lane.b32.xlu0 %v1797_v0, %s2579_s1  ;;  %v1393_v40 = vsel %vm1363_vm8, %v1360_v32, %v1252_v4  ;;  %vm2105_vm8 = vcmask 654336  }
 0x2d9   : > { %v1852_v14 = vcombine.low %v1391_v51, %v1395_v8  ;;  %v1853_v48 = vcombine.high %v1391_v51, %v1395_v8  ;;  %v1836_v18 = vcombine.low %v1389_v19, %v1393_v40  ;;  %v1837_v17 = vcombine.high %v1389_v19, %v1393_v40  ;;  %p2483_p13 = pnand %p2482_p10, %p2476_p8 }
 0x2db   : > { %v1860_v10 = vrot.slane %v1852_v14, %v3243_v41  ;;  %v1867_v53 = vrot.slane %v1853_v48, %v3243_v41  ;;  %v1844_v42 = vrot.slane %v1836_v18, %v3243_v41  ;;  %v1851_v63 = vrot.slane %v1837_v17, %v3243_v41 }
 0x2dc   : > { %1992 = vrot.lane.b32.xlu1 %v1667_v57, %s2577_s8  ;;  %2014 = vrot.lane.b32.xlu0 %v1798_v1, %s2580_s20 }
 0x2dd   : > { %v1900_v32 = vcombine.low %v1844_v42, %v1860_v10  ;;  %v1901_v58 = vcombine.high %v1844_v42, %v1860_v10  ;;  %v1916_v7 = vcombine.low %v1851_v63, %v1867_v53  ;;  %v1917_v52 = vcombine.high %v1851_v63, %v1867_v53 }
 0x2df   : > { %v1908_v25 = vrot.slane %v1900_v32, %v3246_v6  ;;  %v1915_v22 = vrot.slane %v1901_v58, %v3246_v6  ;;  %v1924_v56 = vrot.slane %v1916_v7, %v3246_v6  ;;  %v1931_v59 = vrot.slane %v1917_v52, %v3246_v6 }
 0x2e0   : > { %2022 = vrot.lane.b32.xlu0 %v1799_v60, %s2581_s28 }
 0x2e1   : > { %v1932_v54 = vcombine.low %v1876_v30, %v1908_v25  ;;  %v1933_v41 = vcombine.high %v1876_v30, %v1908_v25  ;;  %v1934_v39 = vcombine.low %v1883_v24, %v1915_v22  ;;  %v1935_v15 = vcombine.high %v1883_v24, %v1915_v22 }
 0x2e2   : > { %v1936_v50 = vcombine.low %v1892_v62, %v1924_v56  ;;  %v1937_v3 = vcombine.high %v1892_v62, %v1924_v56  ;;  %v1938_v28 = vcombine.low %v1899_v27, %v1931_v59  ;;  %v1939_v43 = vcombine.high %v1899_v27, %v1931_v59 }
 0x2e3   : > { %2000 = vrot.lane.b32.xlu1 %v1932_v54, %s2578_s10 }
 0x2e4   : > { %2030 = vrot.lane.b32.xlu0 %v1800_v20, %s2582_s22 }
 0x2e7   : > { %2008 = vrot.lane.b32.xlu1 %v1933_v41, %s2579_s1 }
 0x2e8   : > { %2038 = vrot.lane.b32.xlu0 %v1801_v46, %s2583_s7 }
 0x2eb   : > { %2016 = vrot.lane.b32.xlu1 %v1934_v39, %s2580_s20 }
 0x2ec   : > { %2046 = vrot.lane.b32.xlu0 %v1802_v26, %s2584_s4 }
 0x2ef   : > { %2024 = vrot.lane.b32.xlu1 %v1935_v15, %s2581_s28 }
 0x2f0   : > { %2054 = vrot.lane.b32.xlu0 %v1803_v11, %s2585_s5 }
 0x2f3   : > { %2032 = vrot.lane.b32.xlu1 %v1936_v50, %s2582_s22 }
 0x2f7   : > { %2040 = vrot.lane.b32.xlu1 %v1937_v3, %s2583_s7 }
 0x2fb   : > { %2048 = vrot.lane.b32.xlu1 %v1938_v28, %s2584_s4 }
 0x2ff   : > { %2056 = vrot.lane.b32.xlu1 %v1939_v43, %s2585_s5 }
 0x325   : > { %v1943_v6 = vpop.permute.xlu0 %1942 }
 0x326   : > { %v2061_v36 = vsel %vm2060_vm9, %v1524_v55, %v1943_v6 }
 0x329   : > { %v1951_v29 = vpop.permute.xlu0 %1950 }
 0x32a   : > { %v2064_v51 = vsel %vm2063_vm10, %v2061_v36, %v1951_v29 }
 0x32d   : > { %v1959_v5 = vpop.permute.xlu0 %1958 }
 0x32e   : > { %v2067_v26 = vsel %vm2066_vm11, %v2064_v51, %v1959_v5 }
 0x331   : > { %v1967_v0 = vpop.permute.xlu0 %1966 }
 0x332   : > { %v2070_v11 = vsel %vm2069_vm12, %v2067_v26, %v1967_v0 }
 0x335   : > { %v1975_v60 = vpop.permute.xlu0 %1974 }
 0x336   : > { %v1945_v1 = vpop.permute.xlu1 %1944  ;;  %v2073_v30 = vsel %vm2072_vm13, %v2070_v11, %v1975_v60 }
 0x337   : > { %v2062_v10 = vsel %vm2060_vm9, %v1660_v16, %v1945_v1 }
 0x339   : > { %v1983_v61 = vpop.permute.xlu0 %1982 }
 0x33a   : > { %v1953_v13 = vpop.permute.xlu1 %1952  ;;  %v2076_v31 = vsel %vm2075_vm14, %v2073_v30, %v1983_v61 }
 0x33b   : > { %v2065_v53 = vsel %vm2063_vm10, %v2062_v10, %v1953_v13 }
 0x33d   : > { %v1991_v47 = vpop.permute.xlu0 %1990 }
 0x33e   : > { %v1961_v23 = vpop.permute.xlu1 %1960  ;;  %v2079_v55 = vsel %vm2078_vm15, %v2076_v31, %v1991_v47 }
 0x33f   : > { %v2068_v63 = vsel %vm2066_vm11, %v2065_v53, %v1961_v23 }
 0x342   : > { %v1969_v33 = vpop.permute.xlu1 %1968 }
 0x343   : > { %v2071_v32 = vsel %vm2069_vm12, %v2068_v63, %v1969_v33 }
 0x346   : > { %v1977_v45 = vpop.permute.xlu1 %1976  ;;  %v1999_v34 = vpop.permute.xlu0 %1998 }
 0x347   : > { %v2082_v62 = vsel %vm2081_vm0, %v2079_v55, %v1999_v34  ;;  %v2074_v58 = vsel %vm2072_vm13, %v2071_v32, %v1977_v45 }
 0x34a   : > { %v2007_v38 = vpop.permute.xlu0 %2006  ;;  %v1985_v35 = vpop.permute.xlu1 %1984 }
 0x34b   : > { %v2085_v27 = vsel %vm2084_vm1, %v2082_v62, %v2007_v38  ;;  %v2077_v7 = vsel %vm2075_vm14, %v2074_v58, %v1985_v35 }
 0x34e   : > { %v2015_v20 = vpop.permute.xlu0 %2014  ;;  %v1993_v21 = vpop.permute.xlu1 %1992 }
 0x34f   : > { %v2088_v4 = vsel %vm2087_vm2, %v2085_v27, %v2015_v20  ;;  %v2080_v2 = vsel %vm2078_vm15, %v2077_v7, %v1993_v21 }
 0x352   : > { %v2023_v9 = vpop.permute.xlu0 %2022 }
 0x353   : > { %v2091_v8 = vsel %vm2090_vm3, %v2088_v4, %v2023_v9 }
 0x355   : > { %v2001_v37 = vpop.permute.xlu1 %2000 }
 0x356   : > { %v2031_v46 = vpop.permute.xlu0 %2030  ;;  %v2083_v12 = vsel %vm2081_vm0, %v2080_v2, %v2001_v37 }
 0x357   : > { %v2094_v40 = vsel %vm2093_vm4, %v2091_v8, %v2031_v46 }
 0x359   : > { %v2009_v24 = vpop.permute.xlu1 %2008 }
 0x35a   : > { %v2039_v44 = vpop.permute.xlu0 %2038  ;;  %v2086_v16 = vsel %vm2084_vm1, %v2083_v12, %v2009_v24 }
 0x35b   : > { %v2097_v14 = vsel %vm2096_vm5, %v2094_v40, %v2039_v44 }
 0x35d   : > { %v2017_v49 = vpop.permute.xlu1 %2016 }
 0x35e   : > { %v2047_v19 = vpop.permute.xlu0 %2046  ;;  %v2089_v25 = vsel %vm2087_vm2, %v2086_v16, %v2017_v49 }
 0x35f   : > { %v2100_v18 = vsel %vm2099_vm6, %v2097_v14, %v2047_v19 }
 0x361   : > { %v2025_v48 = vpop.permute.xlu1 %2024 }
 0x362   : > { %v2055_v17 = vpop.permute.xlu0 %2054  ;;  %v2092_v56 = vsel %vm2090_vm3, %v2089_v25, %v2025_v48 }
 0x363   : > { %v2103_v57 = vsel %vm2102_vm7, %v2100_v18, %v2055_v17 }
 0x364   : > { %2106 = vst.msk [vmem:[%s309_s6] sm:$0xff] %vm2105_vm8, %v2103_v57 }
 0x365   : > { %v2033_v42 = vpop.permute.xlu1 %2032 }
 0x366   : > { %v2095_v59 = vsel %vm2093_vm4, %v2092_v56, %v2033_v42 }
 0x369   : > { %v2041_v52 = vpop.permute.xlu1 %2040 }
 0x36a   : > { %v2098_v54 = vsel %vm2096_vm5, %v2095_v59, %v2041_v52 }
 0x36d   : > { %v2049_v22 = vpop.permute.xlu1 %2048 }
 0x36e   : > { %v2101_v41 = vsel %vm2099_vm6, %v2098_v54, %v2049_v22 }
 0x371   : > { %v2057_v39 = vpop.permute.xlu1 %2056 }
 0x372   : > { %v2104_v15 = vsel %vm2102_vm7, %v2101_v41, %v2057_v39 }
 0x373   : > { %2107 = vst.msk [vmem:[%s309_s6 + $0x8] sm:$0xff] %vm2105_vm8, %v2104_v15 }
 0x374   : > { %2486 = shalt.err (!%p2483_p13)
}
 0x375   : > { %s2487_s29 = scalar_lea.hbm %s3861_s26, 256  ;;  %s2491_s1 = scalar_lea.hbm %s3916_s3, 512 }
 0x376   : > { %p2488_p7 = scmp.ne.s32.totalorder %s3861_s26, %s2487_s29  ;;  %p2492_p5 = scmp.lt.u32.totalorder %s3861_s26, %s3916_s3 }
 0x377   : > { %p2493_p1 = scmp.lt.u32.totalorder %s2491_s1, %s2487_s29  ;;  %p2495_p0 = scmp.lt.u32.totalorder %s2487_s29, %s3861_s26 }
 0x378   : > { %p2489_p9 = pnand %p2488_p7, %p4085_p6 }
 0x379   : > { %p2494_p2 = por %p2493_p1, %p2492_p5 }
 0x37a   : > { %p2490_p3 = pneg %p2489_p9 }
 0x37b   : > { %p2496_p12 = por %p2495_p0, %p2494_p2 }
 0x37d   : > { %p2497_p8 = pnand %p2496_p12, %p2490_p3 }
 0x37f   : > { %2500 = shalt.err (!%p2497_p8)
}
 0x380   : > { %s2587_s22 = smov 128   ;;  %s2588_s7 = smov 8  }
 0x381   : > { %2293 = dma.vmem_to_hbm [thread:$0]  (%p4085_p6), %s3854_s11, 256, %s3861_s26, %s2109_s15, %s2587_s22, %s2587_s22, %s2588_s7  }
 0x382 PF: > { %s2139_s4 = sand.u32 1, %s2539_s12   ;;  %p4086_p11 = scmp.ne.s32.totalorder %s3931_s27, 0 }
 0x383   : > { %p4087_p4 = scmp.ge.s32.totalorder %s2559_s17, 2  ;;  %s2140_s5 = scalar_lea.sflag [#allocation4], %s2139_s4 }
 0x385   : > { %p2306_p10 = pnand %p4087_p4, %p4086_p11 }
 0x387   : > { %2534 = dma.done.wait (!%p2306_p10), %s2140_s5, 256  }
 0x388   : > { %2536 = vsyncadd (!%p2306_p10), %s2140_s5, 4294967040  ;;  %s22_s17 = sadd.s32 1, %s2559_s17   ;;  %s4088_s6 = sld [smem:[#allocation14_spill]] }
 0x389   : > { %p19_p13 = scmp.ge.s32.totalorder %s22_s17, 4   ;;  %s4089_s15 = sld [smem:[#allocation12_spill]] }
 0x38a   : > { %s4090_s16 = sld [smem:[#allocation13_spill]]  ;;  %s4091_s12 = smov %s2543_s13 }
 0x38b   : > { %s4092_s13 = smov %s2547_s14  ;;  %21 = sbr.rel (!%p19_p13) target bundleno = 10 (0xa), region = 101 }
 0x38e   : > { %s4093_s14 = smov %s4088_s6 }
 0x392   :  { %2145 = vsyncpa [#allocation3], 1 }
 0x393   :  { %2147 = vsyncpa [#allocation3 + $0x1], 1 }
 0x394   :  { %2148 = vsyncpa [#allocation6], 1 }
 0x395   :  { %2150 = vsyncpa [#allocation6 + $0x1], 1 }
 0x396   :  { %2151 = vsyncpa [#allocation4], 1 }
 0x397   :  { %2153 = vsyncpa [#allocation4 + $0x1], 1 }

// kernel: tpu_custom_call.1
= control target key start
LH: loop header
LB: loop body
LE: loop exit
PB: predicated region body
PF: predicated region fallthrough
CT: control target
= control target key end

     0   :  { %s1868_s0 = inlined_call_operand.hbm [shape: f32[2,16,16], index: 0, kind: input, shape index: {}]   ;;  %s1869_s1 = inlined_call_operand.hbm [shape: f32[2,16,16], index: 1, kind: input, shape index: {}]   ;;  %s1870_s2 = inlined_call_operand.hbm [shape: f32[2,16,16], index: 2, kind: input, shape index: {}]   ;;  %s1871_s3 = inlined_call_operand.hbm [shape: f32[2,16,16], index: 3, kind: output, shape index: {0}]   ;;  %s1872_s4 = inlined_call_operand.hbm [shape: f32[2,16,16], index: 4, kind: output, shape index: {1}]   ;;  %s1873_s5 = inlined_call_operand.hbm [shape: f32[2,16,16], index: 5, kind: output, shape index: {2}]   ;;  %s1874_s6 = inlined_call_operand.hbm [shape: f32[2,16,16], index: 6, kind: output, shape index: {3}]   ;;  %s1875_s7 = inlined_call_operand.hbm [shape: f32[2,16,16], index: 7, kind: output, shape index: {4}]  }
   0x1   :  { %1888 = sst [smem:[#allocation27_spill]] %s1869_s1 }
   0x2   :  { %13 = vsyncpa [#allocation3], 0 }
   0x3   :  { %15 = vsyncpa [#allocation3 + $0x1], 0 }
   0x4   :  { %16 = vsyncpa [#allocation6], 0 }
   0x5   :  { %18 = vsyncpa [#allocation6 + $0x1], 0 }
   0x6   :  { %19 = vsyncpa [#allocation4], 0 }
   0x7   :  { %21 = vsyncpa [#allocation4 + $0x1], 0 }
   0x8   :  { %22 = vsyncpa [#allocation10], 0 }
   0x9   :  { %24 = vsyncpa [#allocation10 + $0x1], 0 }
   0xa   :  { %25 = vsyncpa [#allocation13], 0 }
   0xb   :  { %27 = vsyncpa [#allocation13 + $0x1], 0  ;;  %s1408_s24 = smov 0   ;;  %s1410_s25 = smov 0  }
   0xc   :  { %s1412_s26 = smov 0   ;;  %s1414_s27 = smov 0  }
   0xd   :  { %s1416_s28 = smov 0   ;;  %s1418_s29 = smov 0  }
   0xe LB: > { %1889 = sst [smem:[#allocation20_spill]] %s1332_s24  ;;  %s1439_s30 = sadd.s32 4294967295, %s1352_s29   ;;  %s1352_s29 = sphi %s1418_s29, %s33_s29   ;;  %s1348_s28 = sphi %s1416_s28, %s1918_s28   ;;  %s1344_s27 = sphi %s1414_s27, %s1917_s27   ;;  %s1340_s26 = sphi %s1412_s26, %s1916_s26   ;;  %s1336_s25 = sphi %s1410_s25, %s1920_s25   ;;  %s1332_s24 = sphi %s1408_s24, %s1919_s24  }
   0xf   : > { %1890 = sst [smem:[#allocation21_spill]] %s1340_s26  ;;  %s1876_s8 = sadd.s32 4294967294, %s1352_s29  }
  0x10   : > { %1891 = sst [smem:[#allocation22_spill]] %s1348_s28  ;;  %s45_s9 = sadd.s32 1, %s1348_s28 }
  0x11   : > { %1892 = sst [smem:[#allocation23_spill]] %s1352_s29  ;;  %s62_s10 = sadd.s32 1, %s1340_s26 }
  0x12   : > { %p47_p0 = scmp.ge.s32.totalorder %s45_s9, 2  ;;  %p69_p1 = scmp.ne.s32.totalorder %s1340_s26, %s1336_s25 }
  0x13   : > { %p70_p2 = scmp.eq.s32.totalorder %s1352_s29, 0  ;;  %p75_p3 = scmp.ne.s32.totalorder %s1336_s25, %s1332_s24 }
  0x14   : > { %s1922_s9 = smov (%p47_p0, %s45_s9), 0  ;;  %p76_p5 = scmp.eq.s32.totalorder %s1439_s30, 0 }
  0x15   : > { %1893 = sst [smem:[#allocation24_spill]] %s1922_s9  ;;  %p1451_p4 = por %p70_p2, %p69_p1 }
  0x16   : > { %s57_s12 = ssub.s32 %s1348_s28, %s1922_s9  ;;  %p165_p6 = scmp.eq.s32.totalorder %s1439_s30, 1 }
  0x17   : > { %p60_p7 = scmp.eq.s32.totalorder %s57_s12, 0  ;;  %p1459_p8 = por %p76_p5, %p75_p3 }
  0x18   : > { %p1463_p9 = por %p165_p6, %p69_p1  ;;  %p171_p10 = scmp.eq.s32.totalorder %s1876_s8, 1 }
  0x19   : > { %s1895_s13 = scalar_select %p1459_p8, 1, 0 }
  0x1a   : > { %s1896_s14 = scalar_select %p1463_p9, 1, 0 }
  0x1b   : > { %s1470_s15 = scalar_select %p60_p7, %s1340_s26, %s62_s10  }
  0x1c   : > { %p1472_p11 = por %p171_p10, %p75_p3  ;;  %p1000_p13 = scmp.lt.s32.totalorder %s1352_s29, 2 }
  0x1d   : > { %1897 = sst [smem:[#allocation25_spill]] %s1470_s15  ;;  %s1479_s17 = sand.u32 1, %s1340_s26  }
  0x1e   : > { %s1898_s16 = scalar_select %p1472_p11, 1, 0 }
  0x1f   : > { %s1482_s18 = sshll.u32 %s1348_s28, 8  ;;  %s327_s19 = sand.u32 1, %s1352_s29  }
  0x20   : > { %1899 = sst [smem:[#allocation26_spill]] %s1898_s16  ;;  %p1487_p0 = pnand %p1000_p13, %p1451_p4 }
  0x21   : > { %s916_s21 = sshll.u32 %s1479_s17, 4  ;;  %s1901_s1 = sld [smem:[#allocation27_spill]] }
  0x22   : > { %s1900_s20 = scalar_select %p1487_p0, 1, 0 }
  0x23   : > { %s331_s12 = scalar_lea.vmem [#allocation5], %s916_s21  ;;  %s1500_s11 = scalar_lea.sflag [#allocation6], %s327_s19 }
  0x24   : > { %s340_s8 = sshll.u32 %s331_s12, 4  ;;  %p1506_p2 = pneg %p1487_p0  ;;  %s1498_s8 = int_to_ptr.vmem [resolvable:$true] %s340_s8 }
  0x27   : > { %s1496_s10 = scalar_lea.hbm %s1901_s1, %s1482_s18  ;;  %s1061_s21 = scalar_lea.hbm %s1901_s1, 512 }
  0x28   : > { %s1056_s9 = scalar_lea.hbm %s1496_s10, 256  ;;  %p1062_p5 = scmp.lt.u32.totalorder %s1496_s10, %s1901_s1 }
  0x29   : > { %p1057_p1 = scmp.ne.s32.totalorder %s1496_s10, %s1056_s9  ;;  %p1063_p6 = scmp.lt.u32.totalorder %s1061_s21, %s1056_s9 }
  0x2a   : > { %p1065_p10 = scmp.lt.u32.totalorder %s1056_s9, %s1496_s10 }
  0x2b   : > { %p1059_p3 = pnand %p1506_p2, %p1057_p1  ;;  %p1064_p7 = por %p1063_p6, %p1062_p5 }
  0x2d   : > { %p1060_p4 = pneg %p1059_p3  ;;  %p1066_p13 = por %p1065_p10, %p1064_p7 }
  0x2f   : > { %p1067_p12 = pnand %p1066_p13, %p1060_p4 }
  0x31   : > { %1070 = shalt.err (!%p1067_p12)
}
  0x32   : > { %s1071_s19 = scalar_lea.vmem %s1498_s8, 256  ;;  %s1354_s22 = smov [#allocation5]  }
  0x33   : > { %p1072_p1 = scmp.ne.s32.totalorder %s1498_s8, %s1071_s19  ;;  %s1076_s23 = sshll.u32 %s1354_s22, 4  ;;  %s1077_s23 = int_to_ptr.vmem [resolvable:$false] %s1076_s23 }
  0x34   : > { %s1078_s15 = scalar_lea.vmem %s1077_s23, 512  ;;  %p1079_p9 = scmp.lt.s32.totalorder %s1498_s8, %s1077_s23 }
  0x35   : > { %p1074_p3 = pnand %p1072_p1, %p1506_p2  ;;  %p1080_p8 = scmp.lt.s32.totalorder %s1078_s15, %s1071_s19 }
  0x37   : > { %p1075_p11 = pneg %p1074_p3  ;;  %p1081_p5 = por %p1080_p8, %p1079_p9 }
  0x39   : > { %p1082_p6 = pnand %p1081_p5, %p1075_p11 }
  0x3b   : > { %1085 = shalt.err (!%p1082_p6)
}
  0x3c   : > { %s1355_s9 = smov 128   ;;  %s1356_s21 = smov 8  }
  0x3d   : > { %980 = dma.hbm_to_vmem [thread:$0]  (!%p1487_p0), %s1496_s10, 256, %s1498_s8, %s1500_s11, %s1355_s9, %s1355_s9, %s1356_s21  }
  0x3e   : > { %p922_p12 = scmp.ge.s32.totalorder %s1352_s29, 1  ;;  %p372_p8 = scmp.lt.s32.totalorder %s1352_s29, 3 }
  0x3f   : > { %s1886_s19 = sshll.u32 %s1479_s17, 3  ;;  %s1541_s15 = scalar_lea.hbm %s1868_s0, %s1482_s18 }
  0x40   : > { %p1532_p9 = pnand %p922_p12, %p372_p8  ;;  %s307_s1 = scalar_lea.vmem [#allocation2], %s1886_s19 }
  0x41   : > { %s320_s26 = sshll.u32 %s307_s1, 4  ;;  %s951_s8 = sadd.s32 128, %s1482_s18  ;;  %s1546_s26 = int_to_ptr.vmem [resolvable:$true] %s320_s26 }
  0x42   : > { %s1903_s12 = scalar_select %p1532_p9, 1, 0 }
  0x43   : > { %s1551_s21 = scalar_lea.hbm %s1870_s2, %s951_s8  ;;  %s304_s29 = scalar_lea.sflag [#allocation3], %s1479_s17 }
  0x44   : > { %s1086_s16 = scalar_lea.hbm %s1541_s15, 128  ;;  %s1091_s24 = scalar_lea.hbm %s1868_s0, 512 }
  0x45   : > { %p1087_p11 = scmp.ne.s32.totalorder %s1541_s15, %s1086_s16  ;;  %p1092_p10 = scmp.lt.u32.totalorder %s1541_s15, %s1868_s0 }
  0x46   : > { %p1093_p13 = scmp.lt.u32.totalorder %s1091_s24, %s1086_s16  ;;  %p1095_p3 = scmp.lt.u32.totalorder %s1086_s16, %s1541_s15 }
  0x47   : > { %p1089_p4 = pnand %p1087_p11, %p1506_p2 }
  0x48   : > { %p1094_p1 = por %p1093_p13, %p1092_p10 }
  0x49   : > { %p1090_p7 = pneg %p1089_p4 }
  0x4a   : > { %p1096_p5 = por %p1095_p3, %p1094_p1 }
  0x4c   : > { %p1097_p6 = pnand %p1096_p5, %p1090_p7 }
  0x4e   : > { %1100 = shalt.err (!%p1097_p6)
}
  0x4f   : > { %s1101_s18 = scalar_lea.vmem %s1546_s26, 128  ;;  %s1357_s8 = smov [#allocation2]  }
  0x50   : > { %p1102_p12 = scmp.ne.s32.totalorder %s1546_s26, %s1101_s18  ;;  %s1106_s10 = sshll.u32 %s1357_s8, 4  ;;  %s1107_s10 = int_to_ptr.vmem [resolvable:$false] %s1106_s10 }
  0x51   : > { %s1108_s19 = scalar_lea.vmem %s1107_s10, 256  ;;  %p1109_p4 = scmp.lt.s32.totalorder %s1546_s26, %s1107_s10 }
  0x52   : > { %p1104_p8 = pnand %p1102_p12, %p1506_p2  ;;  %p1110_p9 = scmp.lt.s32.totalorder %s1108_s19, %s1101_s18 }
  0x54   : > { %p1105_p11 = pneg %p1104_p8  ;;  %p1111_p10 = por %p1110_p9, %p1109_p4 }
  0x56   : > { %p1112_p13 = pnand %p1111_p10, %p1105_p11 }
  0x58   : > { %1115 = shalt.err (!%p1112_p13)
}
  0x59   : > { %977 = dma.hbm_to_vmem [thread:$0]  (!%p1487_p0), %s1541_s15, 128, %s1546_s26, %s304_s29  }
  0x5a   : > { %s1904_s24 = sshll.u32 %s1479_s17, 3  ;;  %s1116_s22 = scalar_lea.hbm %s1551_s21, 128 }
  0x5b   : > { %s354_s16 = scalar_lea.vmem [#allocation7], %s1904_s24  ;;  %p1117_p7 = scmp.ne.s32.totalorder %s1551_s21, %s1116_s22 }
  0x5c   : > { %s367_s9 = sshll.u32 %s354_s16, 4  ;;  %s1121_s18 = scalar_lea.hbm %s1870_s2, 512  ;;  %s368_s9 = int_to_ptr.vmem [resolvable:$true] %s367_s9 }
  0x5d   : > { %p1119_p9 = pnand %p1117_p7, %p1506_p2  ;;  %p1122_p3 = scmp.lt.u32.totalorder %s1551_s21, %s1870_s2 }
  0x5e   : > { %p1123_p5 = scmp.lt.u32.totalorder %s1121_s18, %s1116_s22  ;;  %p1125_p12 = scmp.lt.u32.totalorder %s1116_s22, %s1551_s21 }
  0x5f   : > { %p1120_p1 = pneg %p1119_p9 }
  0x60   : > { %p1124_p6 = por %p1123_p5, %p1122_p3 }
  0x62   : > { %p1126_p8 = por %p1125_p12, %p1124_p6 }
  0x64   : > { %p1127_p11 = pnand %p1126_p8, %p1120_p1 }
  0x66   : > { %1130 = shalt.err (!%p1127_p11)
}
  0x67   : > { %s1131_s26 = scalar_lea.vmem %s368_s9, 128  ;;  %s1358_s29 = smov [#allocation7]  }
  0x68   : > { %p1132_p4 = scmp.ne.s32.totalorder %s368_s9, %s1131_s26  ;;  %s1136_s17 = sshll.u32 %s1358_s29, 4  ;;  %s1137_s17 = int_to_ptr.vmem [resolvable:$false] %s1136_s17 }
  0x69   : > { %s1138_s15 = scalar_lea.vmem %s1137_s17, 256  ;;  %p1139_p7 = scmp.lt.s32.totalorder %s368_s9, %s1137_s17 }
  0x6a   : > { %p1134_p10 = pnand %p1132_p4, %p1506_p2  ;;  %p1140_p9 = scmp.lt.s32.totalorder %s1138_s15, %s1131_s26 }
  0x6c   : > { %p1135_p13 = pneg %p1134_p10  ;;  %p1141_p0 = por %p1140_p9, %p1139_p7 }
  0x6e   : > { %p1142_p3 = pnand %p1141_p0, %p1135_p13 }
  0x70   : > { %1145 = shalt.err (!%p1142_p3)
}
  0x71   : > { %p1905_p5 = scmp.ne.s32.totalorder %s1900_s20, 0  ;;  %p1906_p1 = scmp.ne.s32.totalorder %s1903_s12, 0 }
  0x72   : > { %s1598_s28 = sand.u32 (!%p1906_p1), 1, %s1336_s25   ;;  %p1907_p2 = scmp.ne.s32.totalorder (!%p1906_p1), %s1895_s13, 0 }
  0x73   : > { %983 = dma.hbm_to_vmem [thread:$0]  (!%p1905_p5), %s1551_s21, 128, %s368_s9, %s1500_s11  }
  0x74   : > { %376 = sbr.rel (%p1906_p1) target bundleno = 286 (0x11e), region = 32  ;;  %s379_s19 = scalar_lea.sflag (!%p1906_p1), [#allocation3], %s1598_s28 }
  0x7b   : > { %1311 = dma.done.wait (%p1907_p2), %s379_s19, 128  }
  0x7c   : > { %1313 = vsyncadd (%p1907_p2), %s379_s19, 4294967168  ;;  %s1606_s20 = sand.u32 1, %s1439_s30   ;;  %s1609_s11 = sshll.u32 %s1598_s28, 4 }
  0x7d   : > { %s388_s12 = scalar_lea.sflag [#allocation6], %s1606_s20  ;;  %s391_s21 = scalar_lea.vmem [#allocation5], %s1609_s11 }
  0x7e   : > { %1315 = dma.done.wait (%p1907_p2), %s388_s12, 384  }
  0x7f   : > { %1317 = vsyncadd (%p1907_p2), %s388_s12, 4294966912  ;;  %s1618_s24 = sshll.u32 %s1344_s27, 8  ;;  %v1620_v0 = vld [vmem:[%s391_s21] sm:$0xff]  ;;  %v1622_v1 = vld [vmem:[%s391_s21 + $0x8] sm:$0xff]  ;;  %vm508_vm0 = vcmask 1040384   ;;  %s439_s30 = scalar_lea.vmem [#allocation9], %s1609_s11 }
  0x80   : > { %s587_s16 = sshll.u32 %s439_s30, 4  ;;  %vm515_vm1 = vcmask 1046528   ;;  %s1359_s9 = smov 127   ;;  %v509_v2 = vrot.slane %v1620_v0, 7  ;;  %v510_v3 = vrot.slane %v1622_v1, 7  ;;  %v516_v4 = vrot.slane %v1620_v0, 1  ;;  %s1635_s16 = int_to_ptr.vmem [resolvable:$true] %s587_s16 }
  0x81   : > { %499 = vrot.lane.b32.xlu1 %v1620_v0, %s1359_s9  ;;  %s1360_s13 = smov 1   ;;  %s1633_s23 = scalar_lea.hbm %s1872_s4, %s1618_s24  ;;  %v517_v5 = vrot.slane %v1622_v1, 1  ;;  %vm522_vm2 = vcmask 130048  }
  0x82   : > { %490 = vrot.lane.b32.xlu0 %v1620_v0, %s1360_s13  ;;  %s453_s1 = scalar_lea.vmem [#allocation12], %s1609_s11  ;;  %v511_v6 = vsel %vm508_vm0, %v509_v2, %v510_v3  ;;  %v514_v7 = vsel %vm508_vm0, %v1620_v0, %v509_v2  ;;  %s1650_s26 = scalar_lea.hbm %s1874_s6, %s1618_s24 }
  0x83   : > { %s623_s18 = sshll.u32 %s453_s1, 4  ;;  %v518_v8 = vsel %vm515_vm1, %v516_v4, %v517_v5  ;;  %v521_v9 = vsel %vm515_vm1, %v517_v5, %v1622_v1  ;;  %525 = vst.msk [vmem:[%s439_s30] sm:$0xff] %vm522_vm2, %v514_v7  ;;  %526 = vst.msk [vmem:[%s439_s30 + $0x8] sm:$0xff] %vm522_vm2, %v511_v6  ;;  %s1659_s29 = scalar_lea.vmem [#allocation8], %s1609_s11  ;;  %s1656_s18 = int_to_ptr.vmem [resolvable:$true] %s623_s18 }
  0x84   : > { %529 = vst.msk [vmem:[%s453_s1] sm:$0xff] %vm522_vm2, %v518_v8  ;;  %530 = vst.msk [vmem:[%s453_s1 + $0x8] sm:$0xff] %vm522_vm2, %v521_v9  ;;  %s1673_s19 = scalar_lea.hbm %s1871_s3, %s1618_s24  ;;  %s569_s12 = sshll.u32 %s1659_s29, 4  ;;  %s1732_s12 = int_to_ptr.vmem [resolvable:$true] %s569_s12 }
  0x85   : > { %523 = vst.msk [vmem:[%s1659_s29] sm:$0xff] %vm522_vm2, %v1620_v0  ;;  %524 = vst.msk [vmem:[%s1659_s29 + $0x8] sm:$0xff] %vm522_vm2, %v1622_v1  ;;  %501 = vrot.lane.b32.xlu1 %v1622_v1, %s1359_s9  ;;  %s539_s21 = scalar_lea.sflag [#allocation10], %s1606_s20  ;;  %s1146_s30 = scalar_lea.vmem %s1635_s16, 256 }
  0x86   : > { %492 = vrot.lane.b32.xlu0 %v1622_v1, %s1360_s13  ;;  %p1147_p0 = scmp.ne.s32.totalorder %s1635_s16, %s1146_s30  ;;  %p1908_p6 = scmp.ne.s32.totalorder %s1896_s14, 0 }
  0x87   : > { %s1361_s27 = smov [#allocation9]  }
  0x88   : > { %p1148_p12 = pnand %p1147_p0, %p1908_p6  ;;  %s1150_s22 = sshll.u32 %s1361_s27, 4  ;;  %s1151_s22 = int_to_ptr.vmem [resolvable:$false] %s1150_s22 }
  0x89   : > { %s1152_s1 = scalar_lea.vmem %s1151_s22, 512  ;;  %p1153_p11 = scmp.lt.s32.totalorder %s1635_s16, %s1151_s22 }
  0x8a   : > { %p1149_p8 = pneg %p1148_p12  ;;  %p1154_p4 = scmp.lt.s32.totalorder %s1152_s1, %s1146_s30 }
  0x8c   : > { %p1155_p10 = por %p1154_p4, %p1153_p11 }
  0x8e   : > { %p1156_p13 = pnand %p1155_p10, %p1149_p8 }
  0x90   : > { %1159 = shalt.err (!%p1156_p13)
}
  0x91   : > { %s1160_s9 = scalar_lea.hbm %s1633_s23, 256  ;;  %s1164_s10 = scalar_lea.hbm %s1872_s4, 512 }
  0x92   : > { %p1161_p7 = scmp.ne.s32.totalorder %s1633_s23, %s1160_s9  ;;  %p1165_p5 = scmp.lt.u32.totalorder %s1633_s23, %s1872_s4 }
  0x93   : > { %p1166_p1 = scmp.lt.u32.totalorder %s1164_s10, %s1160_s9  ;;  %p1168_p0 = scmp.lt.u32.totalorder %s1160_s9, %s1633_s23 }
  0x94   : > { %p1162_p9 = pnand %p1161_p7, %p1908_p6 }
  0x95   : > { %p1167_p2 = por %p1166_p1, %p1165_p5 }
  0x96   : > { %p1163_p3 = pneg %p1162_p9 }
  0x97   : > { %p1169_p12 = por %p1168_p0, %p1167_p2 }
  0x99   : > { %p1170_p8 = pnand %p1169_p12, %p1163_p3 }
  0x9b   : > { %1173 = shalt.err (!%p1170_p8)
}
  0x9c   : > { %s1362_s30 = smov 128   ;;  %s1363_s27 = smov 8  }
  0x9d   : > { %965 = dma.vmem_to_hbm [thread:$0]  (%p1908_p6), %s1635_s16, 256, %s1633_s23, %s539_s21, %s1362_s30, %s1362_s30, %s1363_s27  }
  0x9e   : > { %s549_s22 = scalar_lea.sflag [#allocation13], %s1606_s20  ;;  %s1174_s1 = scalar_lea.vmem %s1656_s18, 256 }
  0x9f   : > { %p1175_p11 = scmp.ne.s32.totalorder %s1656_s18, %s1174_s1  ;;  %s1364_s9 = smov [#allocation12]  }
  0xa0   : > { %s1178_s13 = sshll.u32 %s1364_s9, 4  ;;  %s1179_s13 = int_to_ptr.vmem [resolvable:$false] %s1178_s13 }
  0xa1   : > { %p1176_p4 = pnand %p1175_p11, %p1908_p6  ;;  %s1180_s8 = scalar_lea.vmem %s1179_s13, 512 }
  0xa2   : > { %p1181_p13 = scmp.lt.s32.totalorder %s1656_s18, %s1179_s13  ;;  %p1182_p7 = scmp.lt.s32.totalorder %s1180_s8, %s1174_s1 }
  0xa3   : > { %p1177_p10 = pneg %p1176_p4 }
  0xa4   : > { %p1183_p9 = por %p1182_p7, %p1181_p13 }
  0xa6   : > { %p1184_p3 = pnand %p1183_p9, %p1177_p10 }
  0xa8   : > { %1187 = shalt.err (!%p1184_p3)
}
  0xa9   : > { %s1188_s16 = scalar_lea.hbm %s1650_s26, 256  ;;  %s1192_s17 = scalar_lea.hbm %s1874_s6, 512 }
  0xaa   : > { %p1189_p5 = scmp.ne.s32.totalorder %s1650_s26, %s1188_s16  ;;  %p1193_p0 = scmp.lt.u32.totalorder %s1650_s26, %s1874_s6 }
  0xab   : > { %p1194_p12 = scmp.lt.u32.totalorder %s1192_s17, %s1188_s16  ;;  %p1196_p11 = scmp.lt.u32.totalorder %s1188_s16, %s1650_s26 }
  0xac   : > { %p1190_p1 = pnand %p1189_p5, %p1908_p6 }
  0xad   : > { %p1195_p8 = por %p1194_p12, %p1193_p0 }
  0xae   : > { %p1191_p2 = pneg %p1190_p1 }
  0xaf   : > { %p1197_p4 = por %p1196_p11, %p1195_p8 }
  0xb1   : > { %p1198_p10 = pnand %p1197_p4, %p1191_p2 }
  0xb3   : > { %1201 = shalt.err (!%p1198_p10)
}
  0xb4   : > { %967 = dma.vmem_to_hbm [thread:$0]  (%p1908_p6), %s1656_s18, 256, %s1650_s26, %s549_s22, %s1362_s30, %s1362_s30, %s1363_s27  }
  0xb5   : > { %s534_s1 = scalar_lea.sflag [#allocation4], %s1598_s28  ;;  %s1202_s13 = scalar_lea.vmem %s1732_s12, 256 }
  0xb6   : > { %p1203_p13 = scmp.ne.s32.totalorder %s1732_s12, %s1202_s13  ;;  %s1365_s8 = smov [#allocation8]  }
  0xb7   : > { %s1206_s16 = sshll.u32 %s1365_s8, 4  ;;  %s1207_s16 = int_to_ptr.vmem [resolvable:$false] %s1206_s16 }
  0xb8   : > { %p1204_p7 = pnand %p1203_p13, %p1908_p6  ;;  %s1208_s23 = scalar_lea.vmem %s1207_s16, 512 }
  0xb9   : > { %p1209_p3 = scmp.lt.s32.totalorder %s1732_s12, %s1207_s16  ;;  %p1210_p5 = scmp.lt.s32.totalorder %s1208_s23, %s1202_s13 }
  0xba   : > { %p1205_p9 = pneg %p1204_p7 }
  0xbb   : > { %p1211_p1 = por %p1210_p5, %p1209_p3 }
  0xbd   : > { %p1212_p2 = pnand %p1211_p1, %p1205_p9 }
  0xbf   : > { %1215 = shalt.err (!%p1212_p2)
}
  0xc0   : > { %s1216_s18 = scalar_lea.hbm %s1673_s19, 256  ;;  %s1220_s10 = scalar_lea.hbm %s1871_s3, 512 }
  0xc1   : > { %p1217_p0 = scmp.ne.s32.totalorder %s1673_s19, %s1216_s18  ;;  %p1221_p11 = scmp.lt.u32.totalorder %s1673_s19, %s1871_s3 }
  0xc2   : > { %p1222_p4 = scmp.lt.u32.totalorder %s1220_s10, %s1216_s18  ;;  %p1224_p13 = scmp.lt.u32.totalorder %s1216_s18, %s1673_s19 }
  0xc3   : > { %p1218_p12 = pnand %p1217_p0, %p1908_p6 }
  0xc4   : > { %p1223_p10 = por %p1222_p4, %p1221_p11 }
  0xc5   : > { %p1219_p8 = pneg %p1218_p12 }
  0xc6   : > { %p1225_p7 = por %p1224_p13, %p1223_p10 }
  0xc8   : > { %p1226_p9 = pnand %p1225_p7, %p1219_p8 }
  0xca   : > { %1229 = shalt.err (!%p1226_p9)
}
  0xcb   : > { %964 = dma.vmem_to_hbm [thread:$0]  (%p1908_p6), %s1732_s12, 256, %s1673_s19, %s534_s1, %s1362_s30, %s1362_s30, %s1363_s27   ;;  %vm505_vm3 = vcmask 121856   ;;  %vm496_vm4 = vcmask 7168  }
  0xcc   : > { %s446_s9 = scalar_lea.vmem [#allocation11], %s1609_s11  ;;  %s460_s28 = scalar_lea.vmem [#allocation14], %s1609_s11 }
  0xcd   : > { %s605_s13 = sshll.u32 %s446_s9, 4  ;;  %s641_s8 = sshll.u32 %s460_s28, 4  ;;  %s1769_s13 = int_to_ptr.vmem [resolvable:$true] %s605_s13  ;;  %s1777_s8 = int_to_ptr.vmem [resolvable:$true] %s641_s8 }
  0xce   : > { %s1775_s1 = scalar_lea.hbm %s1873_s5, %s1618_s24  ;;  %s1787_s23 = scalar_lea.hbm %s1875_s7, %s1618_s24 }
  0xcf   : > { %s1230_s18 = scalar_lea.vmem %s1769_s13, 256  ;;  %s1366_s26 = smov [#allocation11]  }
  0xd0   : > { %p1231_p3 = scmp.ne.s32.totalorder %s1769_s13, %s1230_s18  ;;  %s1234_s29 = sshll.u32 %s1366_s26, 4  ;;  %s1235_s29 = int_to_ptr.vmem [resolvable:$false] %s1234_s29 }
  0xd1   : > { %s1236_s10 = scalar_lea.vmem %s1235_s29, 512  ;;  %p1237_p2 = scmp.lt.s32.totalorder %s1769_s13, %s1235_s29 }
  0xd2   : > { %p1232_p5 = pnand %p1231_p3, %p1908_p6  ;;  %p1238_p0 = scmp.lt.s32.totalorder %s1236_s10, %s1230_s18 }
  0xd4   : > { %p1233_p1 = pneg %p1232_p5  ;;  %p1239_p12 = por %p1238_p0, %p1237_p2 }
  0xd6   : > { %p1240_p8 = pnand %p1239_p12, %p1233_p1 }
  0xf3   : > { %v500_v10 = vpop.permute.xlu1 %499 }
  0xf4   : > { %v491_v11 = vpop.permute.xlu0 %490  ;;  %v506_v12 = vsel %vm505_vm3, %v500_v10, %v1620_v0 }
  0xf5   : > { %v497_v13 = vsel %vm496_vm4, %v1620_v0, %v491_v11  ;;  %527 = vst.msk [vmem:[%s446_s9] sm:$0xff] %vm522_vm2, %v506_v12 }
  0xf6   : > { %531 = vst.msk [vmem:[%s460_s28] sm:$0xff] %vm522_vm2, %v497_v13 }
  0xf7   : > { %v502_v14 = vpop.permute.xlu1 %501 }
  0xf8   : > { %v493_v15 = vpop.permute.xlu0 %492  ;;  %v507_v16 = vsel %vm505_vm3, %v502_v14, %v1622_v1 }
  0xf9   : > { %v498_v17 = vsel %vm496_vm4, %v1622_v1, %v493_v15  ;;  %528 = vst.msk [vmem:[%s446_s9 + $0x8] sm:$0xff] %vm522_vm2, %v507_v16 }
  0xfa   : > { %532 = vst.msk [vmem:[%s460_s28 + $0x8] sm:$0xff] %vm522_vm2, %v498_v17 }
  0xfb   : > { %1243 = shalt.err (!%p1240_p8)
}
  0xfc   : > { %s1244_s24 = scalar_lea.hbm %s1775_s1, 256  ;;  %s1248_s9 = scalar_lea.hbm %s1873_s5, 512 }
  0xfd   : > { %p1245_p11 = scmp.ne.s32.totalorder %s1775_s1, %s1244_s24  ;;  %p1249_p13 = scmp.lt.u32.totalorder %s1775_s1, %s1873_s5 }
  0xfe   : > { %p1250_p7 = scmp.lt.u32.totalorder %s1248_s9, %s1244_s24  ;;  %p1252_p3 = scmp.lt.u32.totalorder %s1244_s24, %s1775_s1 }
  0xff   : > { %p1246_p4 = pnand %p1245_p11, %p1908_p6 }
 0x100   : > { %p1251_p9 = por %p1250_p7, %p1249_p13 }
 0x101   : > { %p1247_p10 = pneg %p1246_p4 }
 0x102   : > { %p1253_p5 = por %p1252_p3, %p1251_p9 }
 0x104   : > { %p1254_p1 = pnand %p1253_p5, %p1247_p10 }
 0x106   : > { %1257 = shalt.err (!%p1254_p1)
}
 0x107   : > { %966 = dma.vmem_to_hbm [thread:$0]  (%p1908_p6), %s1769_s13, 256, %s1775_s1, %s539_s21, %s1362_s30, %s1362_s30, %s1363_s27  }
 0x108   : > { %s1258_s12 = scalar_lea.vmem %s1777_s8, 256  ;;  %s1367_s11 = smov [#allocation14]  }
 0x109   : > { %p1259_p2 = scmp.ne.s32.totalorder %s1777_s8, %s1258_s12  ;;  %s1262_s16 = sshll.u32 %s1367_s11, 4  ;;  %s1263_s16 = int_to_ptr.vmem [resolvable:$false] %s1262_s16 }
 0x10a   : > { %s1264_s18 = scalar_lea.vmem %s1263_s16, 512  ;;  %p1265_p8 = scmp.lt.s32.totalorder %s1777_s8, %s1263_s16 }
 0x10b   : > { %p1260_p0 = pnand %p1259_p2, %p1908_p6  ;;  %p1266_p11 = scmp.lt.s32.totalorder %s1264_s18, %s1258_s12 }
 0x10d   : > { %p1261_p12 = pneg %p1260_p0  ;;  %p1267_p4 = por %p1266_p11, %p1265_p8 }
 0x10f   : > { %p1268_p10 = pnand %p1267_p4, %p1261_p12 }
 0x111   : > { %1271 = shalt.err (!%p1268_p10)
}
 0x112   : > { %s1272_s21 = scalar_lea.hbm %s1787_s23, 256  ;;  %s1276_s26 = scalar_lea.hbm %s1875_s7, 512 }
 0x113   : > { %p1273_p13 = scmp.ne.s32.totalorder %s1787_s23, %s1272_s21  ;;  %p1277_p3 = scmp.lt.u32.totalorder %s1787_s23, %s1875_s7 }
 0x114   : > { %p1278_p5 = scmp.lt.u32.totalorder %s1276_s26, %s1272_s21  ;;  %p1280_p2 = scmp.lt.u32.totalorder %s1272_s21, %s1787_s23 }
 0x115   : > { %p1274_p7 = pnand %p1273_p13, %p1908_p6 }
 0x116   : > { %p1279_p1 = por %p1278_p5, %p1277_p3 }
 0x117   : > { %p1275_p9 = pneg %p1274_p7 }
 0x118   : > { %p1281_p0 = por %p1280_p2, %p1279_p1 }
 0x11a   : > { %p1282_p12 = pnand %p1281_p0, %p1275_p9 }
 0x11c   : > { %1285 = shalt.err (!%p1282_p12)
}
 0x11d   : > { %968 = dma.vmem_to_hbm [thread:$0]  (%p1908_p6), %s1777_s8, 256, %s1787_s23, %s549_s22, %s1362_s30, %s1362_s30, %s1363_s27  }
 0x11e PF: > { %s1909_s24 = sld [smem:[#allocation20_spill]]  ;;  %s1910_s17 = sld [smem:[#allocation26_spill]] }
 0x11f   : > { %s1911_s15 = sld [smem:[#allocation23_spill]] }
 0x124   : > { %s656_s9 = sand.u32 1, %s1909_s24   ;;  %p1912_p8 = scmp.ne.s32.totalorder %s1910_s17, 0 }
 0x125   : > { %p1913_p11 = scmp.ge.s32.totalorder %s1911_s15, 2  ;;  %s657_s28 = scalar_lea.sflag [#allocation4], %s656_s9 }
 0x127   : > { %p985_p4 = pnand %p1913_p11, %p1912_p8 }
 0x129   : > { %1319 = dma.done.wait (!%p985_p4), %s657_s28, 256  }
 0x12a   : > { %1321 = vsyncadd (!%p985_p4), %s657_s28, 4294967040  ;;  %s1914_s14 = sadd.s32 4294967294, %s1911_s15  }
 0x12b   : > { %s665_s19 = sand.u32 1, %s1914_s14  }
 0x12c   : > { %s666_s12 = scalar_lea.sflag [#allocation10], %s665_s19 }
 0x12d   : > { %1323 = dma.done.wait (!%p985_p4), %s666_s12, 512  }
 0x12e   : > { %1325 = vsyncadd (!%p985_p4), %s666_s12, 4294966784  ;;  %s684_s20 = scalar_lea.sflag [#allocation13], %s665_s19 }
 0x12f   : > { %1327 = dma.done.wait (!%p985_p4), %s684_s20, 512  }
 0x130   : > { %1329 = vsyncadd (!%p985_p4), %s684_s20, 4294966784  ;;  %s33_s29 = sadd.s32 1, %s1911_s15   ;;  %s1915_s30 = sld [smem:[#allocation21_spill]] }
 0x131   : > { %p30_p6 = scmp.ge.s32.totalorder %s33_s29, 4   ;;  %s1916_s26 = sld [smem:[#allocation25_spill]] }
 0x132   : > { %s1917_s27 = sld [smem:[#allocation22_spill]]  ;;  %s1918_s28 = sld [smem:[#allocation24_spill]] }
 0x133   : > { %s1919_s24 = smov %s1336_s25  ;;  %32 = sbr.rel (!%p30_p6) target bundleno = 14 (0xe), region = 165 }
 0x136   : > { %s1920_s25 = smov %s1915_s30 }
 0x13a   :  { %698 = vsyncpa [#allocation3], 1 }
 0x13b   :  { %700 = vsyncpa [#allocation3 + $0x1], 1 }
 0x13c   :  { %701 = vsyncpa [#allocation6], 1 }
 0x13d   :  { %703 = vsyncpa [#allocation6 + $0x1], 1 }
 0x13e   :  { %704 = vsyncpa [#allocation4], 1 }
 0x13f   :  { %706 = vsyncpa [#allocation4 + $0x1], 1 }
 0x140   :  { %707 = vsyncpa [#allocation10], 1 }
 0x141   :  { %709 = vsyncpa [#allocation10 + $0x1], 1 }
 0x142   :  { %710 = vsyncpa [#allocation13], 1 }
 0x143   :  { %712 = vsyncpa [#allocation13 + $0x1], 1 }

</bundles_post_ra>
